<compile_context>
chip_gen: v6e
topology: v6e:2x2x1
jax: 0.10.0
libtpu: 0.0.40
codegen_flags: <defaults>
</compile_context>

<pallas_src>
import functools
import numpy as np
import jax
import jax.numpy as jnp
from jax.experimental import pallas as pl
from jax.experimental.pallas import tpu as pltpu


# ----------------------------- configuration --------------------------------
B = 8            # batch
X_DIM = 16       # x_dim (action_dim + state_dim)
ACTION_DIM = 6
T_EMB = 16       # time-embedding width
HIDDEN = 32      # MLP hidden width
N_TIMESTEPS = 10
MAX_ACTION = 1.0
# predict_epsilon=True, clip_denoised=True (as in the reference defaults)


# ----------------------- diffusion schedule (buffers) -----------------------
def make_schedule(n_timesteps):
    # linear_beta_schedule
    betas = np.linspace(1e-4, 2e-2, n_timesteps, dtype=np.float64)
    alphas = 1.0 - betas
    alphas_cumprod = np.cumprod(alphas, axis=0)
    alphas_cumprod_prev = np.concatenate([np.ones(1), alphas_cumprod[:-1]])
    posterior_variance = betas * (1.0 - alphas_cumprod_prev) / (1.0 - alphas_cumprod)
    sched = dict(
        sqrt_recip_alphas_cumprod=np.sqrt(1.0 / alphas_cumprod),
        sqrt_recipm1_alphas_cumprod=np.sqrt(1.0 / alphas_cumprod - 1.0),
        posterior_mean_coef1=betas * np.sqrt(alphas_cumprod_prev) / (1.0 - alphas_cumprod),
        posterior_mean_coef2=(1.0 - alphas_cumprod_prev) * np.sqrt(alphas) / (1.0 - alphas_cumprod),
        # exp(0.5 * log(clip(var, 1e-20))) == sqrt(clip(var, 1e-20))  (folded)
        posterior_std=np.sqrt(np.clip(posterior_variance, 1e-20, None)),
    )
    return {k: np.asarray(v, dtype=np.float32) for k, v in sched.items()}


# ------------------------- synthetic denoiser model --------------------------
# model(x, t):  t -> sinusoidal emb -> Linear -> Mish -> Linear  (time_mlp)
#               concat([x, temb]) -> Linear -> Mish -> Linear -> Mish -> Linear
# The concat-matmul is split as x @ W1x + temb @ W1t; since the temb branch is
# x-independent it is fully precomputed per timestep into a bias table.
def init_params(key):
    ks = jax.random.split(key, 8)

    def lin(k, fan_in, fan_out):
        return jax.random.normal(k, (fan_in, fan_out), jnp.float32) / np.sqrt(fan_in)

    return dict(
        tw1=lin(ks[0], T_EMB, 2 * T_EMB), tb1=jnp.zeros((1, 2 * T_EMB), jnp.float32),
        tw2=lin(ks[1], 2 * T_EMB, T_EMB), tb2=jnp.zeros((1, T_EMB), jnp.float32),
        w1x=lin(ks[2], X_DIM, HIDDEN),
        w1t=lin(ks[3], T_EMB, HIDDEN),
        b1=jnp.zeros((1, HIDDEN), jnp.float32),
        w2=lin(ks[4], HIDDEN, HIDDEN), b2=jnp.zeros((1, HIDDEN), jnp.float32),
        w3=lin(ks[5], HIDDEN, X_DIM), b3=jnp.zeros((1, X_DIM), jnp.float32),
    )


def mish_ref(x):
    return x * jnp.tanh(jax.nn.softplus(x))


def time_bias_table(params):
    """Precompute tbias[t] = time_mlp(t) @ W1t + b1  -> (N_TIMESTEPS, HIDDEN)."""
    t = jnp.arange(N_TIMESTEPS, dtype=jnp.float32)
    half = T_EMB // 2
    freqs = jnp.exp(-jnp.log(10000.0) * jnp.arange(half, dtype=jnp.float32) / (half - 1))
    args = t[:, None] * freqs[None, :]
    emb = jnp.concatenate([jnp.sin(args), jnp.cos(args)], axis=-1)      # (T, T_EMB)
    h = mish_ref(emb @ params["tw1"] + params["tb1"])
    temb = h @ params["tw2"] + params["tb2"]                            # (T, T_EMB)
    return temb @ params["w1t"] + params["b1"]                          # (T, HIDDEN)


# ------------------------------ Pallas kernel --------------------------------
# Entire p_sample_loop in one invocation. Per (statically unrolled) step t:
#   eps      = MLP(x) + tbias[t] folded into layer 1
#   x_recon  = sqrt_recip_ac[t]*x - sqrt_recipm1_ac[t]*eps          (predict_epsilon)
#   x_recon[:, :action_dim] clamped to [-max_action, max_action]    (clip_denoised)
#   mean     = coef1[t]*x_recon + coef2[t]*x
#   x        = mean + nonzero_mask[t]*posterior_std[t]*noise[t]
# Final sample() clamp of action dims applied before the single HBM store.
def ddpm_sample_kernel(x0_ref, noise_ref, tbias_ref,
                       w1x_ref, w2_ref, b2_ref, w3_ref, b3_ref,
                       out_ref,
                       *, coefs, n_timesteps, action_dim, max_action):
    x = x0_ref[...]                              # (B, X_DIM), carried in vregs
    w1x = w1x_ref[...]
    w2 = w2_ref[...]
    b2 = b2_ref[...]
    w3 = w3_ref[...]
    b3 = b3_ref[...]

    # action-column mask, hoisted out of the loop
    col = jax.lax.broadcasted_iota(jnp.int32, x.shape, 1)
    action_mask = col < action_dim

    def mish_fast(v):
        # tanh(softplus(v)) = ((1+e^v)^2 - 1) / ((1+e^v)^2 + 1) = 1 - 2/(s+1)
        u = jnp.exp(v)                                       # EUP
        s = (1.0 + u) * (1.0 + u)                            # VPU
        return v * (1.0 - 2.0 * pl.reciprocal(s + 1.0, approx=True))   # EUP (vrcp)

    for step in range(n_timesteps):
        t = n_timesteps - 1 - step
        c_recip, c_recipm1, pm1, pm2, std_masked = coefs[t]  # compile-time constants

        # denoiser MLP (time branch folded into tbias row t)
        h = (jnp.dot(x, w1x, preferred_element_type=jnp.float32)
             + tbias_ref[pl.ds(t, 1), :])
        h = mish_fast(h)
        h = jnp.dot(h, w2, preferred_element_type=jnp.float32) + b2
        h = mish_fast(h)
        eps = jnp.dot(h, w3, preferred_element_type=jnp.float32) + b3

        # predict_start_from_noise (predict_epsilon=True)
        x_recon = c_recip * x - c_recipm1 * eps

        # clip_denoised: clamp only the first `action_dim` feature columns
        x_recon = jnp.where(action_mask,
                            jnp.clip(x_recon, -max_action, max_action),
                            x_recon)

        # q_posterior mean + sampling noise (noise skipped statically at t == 0)
        x = pm1 * x_recon + pm2 * x
        if std_masked != 0.0:
            x = x + std_masked * noise_ref[t]

    # sample(): final clamp of the action dims, then the single HBM writeback
    x = jnp.where(action_mask, jnp.clip(x, -max_action, max_action), x)
    out_ref[...] = x


def build_sampler(coefs):
    kernel = functools.partial(ddpm_sample_kernel,
                               coefs=coefs,
                               n_timesteps=N_TIMESTEPS,
                               action_dim=ACTION_DIM,
                               max_action=MAX_ACTION)
    n_inputs = 8
    return pl.pallas_call(
        kernel,
        out_shape=jax.ShapeDtypeStruct((B, X_DIM), jnp.float32),
        in_specs=[pl.BlockSpec(memory_space=pltpu.MemorySpace.VMEM)] * n_inputs,
        out_specs=pl.BlockSpec(memory_space=pltpu.MemorySpace.VMEM),
    )


# ------------------------------ host wrappers --------------------------------
def schedule_coefs(sched):
    return tuple(
        (float(sched["sqrt_recip_alphas_cumprod"][t]),
         float(sched["sqrt_recipm1_alphas_cumprod"][t]),
         float(sched["posterior_mean_coef1"][t]),
         float(sched["posterior_mean_coef2"][t]),
         0.0 if t == 0 else float(sched["posterior_std"][t]))   # nonzero_mask folded
        for t in range(N_TIMESTEPS))


def diffusion_forward(key, params, sched):
    """Equivalent of Diffusion.forward(shape) == sample(shape)."""
    tbias = time_bias_table(params)                      # (T, HIDDEN), once
    coefs = schedule_coefs(sched)
    sampler = build_sampler(coefs)

    k0, kn = jax.random.split(key)
    x0 = jax.random.normal(k0, (B, X_DIM), jnp.float32)              # x ~ N(0, I)
    noise = jax.random.normal(kn, (N_TIMESTEPS, B, X_DIM), jnp.float32)

    out = sampler(x0, noise, tbias,
                  params["w1x"], params["w2"], params["b2"],
                  params["w3"], params["b3"])
    return out, (x0, noise, tbias, coefs)


def reference_forward(x0, noise, tbias, coefs, params):
    """Pure-JAX reference of the same fused sampling loop (exact Mish)."""
    x = x0
    for step in range(N_TIMESTEPS):
        t = N_TIMESTEPS - 1 - step
        c_recip, c_recipm1, pm1, pm2, std = coefs[t]
        h = x @ params["w1x"] + tbias[t][None, :]
        h = mish_ref(h)
        h = h @ params["w2"] + params["b2"]
        h = mish_ref(h)
        eps = h @ params["w3"] + params["b3"]
        x_recon = c_recip * x - c_recipm1 * eps
        x_recon = x_recon.at[:, :ACTION_DIM].set(
            jnp.clip(x_recon[:, :ACTION_DIM], -MAX_ACTION, MAX_ACTION))
        x = pm1 * x_recon + pm2 * x + std * noise[t]
    x = x.at[:, :ACTION_DIM].set(jnp.clip(x[:, :ACTION_DIM], -MAX_ACTION, MAX_ACTION))
    return x


if __name__ == "__main__":
    key = jax.random.PRNGKey(0)
    key, kp = jax.random.split(key)
    params = init_params(kp)
    sched = make_schedule(N_TIMESTEPS)

    out, (x0, noise, tbias, coefs) = diffusion_forward(key, params, sched)
    out = jax.block_until_ready(out)

    assert out.shape == (B, X_DIM), out.shape
    assert bool(jnp.all(jnp.isfinite(out)))
    # action dims must respect max_action after the final clamp
    assert bool(jnp.all(jnp.abs(out[:, :ACTION_DIM]) <= MAX_ACTION + 1e-6))

    # numerical check vs. pure-JAX reference (approx reciprocal in Mish -> loose tol)
    ref = jax.block_until_ready(reference_forward(x0, noise, tbias, coefs, params))
    max_err = float(jnp.max(jnp.abs(out - ref)))
    assert max_err < 5e-2, f"max abs error vs reference: {max_err}"

    print("KERNEL_OK")
</pallas_src>

<mosaic_0001>
module attributes {stable_mosaic.version = 11 : i64} {
  func.func @ddpm_sample_kernel(%arg0: memref<8x16xf32, #tpu.memory_space<vmem>>, %arg1: memref<10x8x16xf32, #tpu.memory_space<vmem>>, %arg2: memref<10x32xf32, #tpu.memory_space<vmem>>, %arg3: memref<16x32xf32, #tpu.memory_space<vmem>>, %arg4: memref<32x32xf32, #tpu.memory_space<vmem>>, %arg5: memref<1x32xf32, #tpu.memory_space<vmem>>, %arg6: memref<32x16xf32, #tpu.memory_space<vmem>>, %arg7: memref<1x16xf32, #tpu.memory_space<vmem>>, %arg8: memref<8x16xf32, #tpu.memory_space<vmem>>) attributes {dimension_semantics = [], scalar_prefetch = 0 : i64, scratch_operands = 0 : i64, tpu.core_type = #tpu.core_type<tc>} {
    %c0 = arith.constant 0 : index
    %c0_0 = arith.constant 0 : index
    %0 = vector.load %arg0[%c0, %c0_0] : memref<8x16xf32, #tpu.memory_space<vmem>>, vector<8x16xf32>
    %c0_1 = arith.constant 0 : index
    %c0_2 = arith.constant 0 : index
    %1 = vector.load %arg3[%c0_1, %c0_2] : memref<16x32xf32, #tpu.memory_space<vmem>>, vector<16x32xf32>
    %c0_3 = arith.constant 0 : index
    %c0_4 = arith.constant 0 : index
    %2 = vector.load %arg4[%c0_3, %c0_4] : memref<32x32xf32, #tpu.memory_space<vmem>>, vector<32x32xf32>
    %c0_5 = arith.constant 0 : index
    %c0_6 = arith.constant 0 : index
    %3 = vector.load %arg5[%c0_5, %c0_6] : memref<1x32xf32, #tpu.memory_space<vmem>>, vector<1x32xf32>
    %c0_7 = arith.constant 0 : index
    %c0_8 = arith.constant 0 : index
    %4 = vector.load %arg6[%c0_7, %c0_8] : memref<32x16xf32, #tpu.memory_space<vmem>>, vector<32x16xf32>
    %c0_9 = arith.constant 0 : index
    %c0_10 = arith.constant 0 : index
    %5 = vector.load %arg7[%c0_9, %c0_10] : memref<1x16xf32, #tpu.memory_space<vmem>>, vector<1x16xf32>
    %6 = tpu.iota {dimensions = array<i32: 1>} : vector<8x16xi32>
    %c6_i32 = arith.constant 6 : i32
    %7 = vector.broadcast %c6_i32 : i32 to vector<8x16xi32>
    %8 = arith.cmpi slt, %6, %7 : vector<8x16xi32>
    %cst = arith.constant dense<0.000000e+00> : vector<8x32xf32>
    %9 = tpu.matmul %0, %1, %cst {dimension_numbers = #tpu.dot_dimension_numbers<[1], [0], [0], [1], [0, 0, 1, 1], [], []>} : vector<8x16xf32>, vector<16x32xf32>, vector<8x32xf32> -> vector<8x32xf32>
    %c9 = arith.constant 9 : index
    %c0_11 = arith.constant 0 : index
    %10 = vector.load %arg2[%c9, %c0_11] : memref<10x32xf32, #tpu.memory_space<vmem>>, vector<1x32xf32>
    %11 = vector.broadcast %10 : vector<1x32xf32> to vector<8x32xf32>
    %12 = arith.addf %9, %11 : vector<8x32xf32>
    %13 = math.exp %12 : vector<8x32xf32>
    %cst_12 = arith.constant 1.000000e+00 : f32
    %14 = vector.broadcast %cst_12 : f32 to vector<8x32xf32>
    %15 = arith.addf %14, %13 : vector<8x32xf32>
    %cst_13 = arith.constant 1.000000e+00 : f32
    %16 = vector.broadcast %cst_13 : f32 to vector<8x32xf32>
    %17 = arith.addf %16, %13 : vector<8x32xf32>
    %18 = arith.mulf %15, %17 : vector<8x32xf32>
    %cst_14 = arith.constant 1.000000e+00 : f32
    %19 = vector.broadcast %cst_14 : f32 to vector<8x32xf32>
    %20 = arith.addf %18, %19 : vector<8x32xf32>
    %21 = tpu.reciprocal %20 {approx = true} : vector<8x32xf32> -> vector<8x32xf32>
    %cst_15 = arith.constant 2.000000e+00 : f32
    %22 = vector.broadcast %cst_15 : f32 to vector<8x32xf32>
    %23 = arith.mulf %22, %21 : vector<8x32xf32>
    %cst_16 = arith.constant 1.000000e+00 : f32
    %24 = vector.broadcast %cst_16 : f32 to vector<8x32xf32>
    %25 = arith.subf %24, %23 : vector<8x32xf32>
    %26 = arith.mulf %12, %25 : vector<8x32xf32>
    %cst_17 = arith.constant dense<0.000000e+00> : vector<8x32xf32>
    %27 = tpu.matmul %26, %2, %cst_17 {dimension_numbers = #tpu.dot_dimension_numbers<[1], [0], [0], [1], [0, 0, 1, 1], [], []>} : vector<8x32xf32>, vector<32x32xf32>, vector<8x32xf32> -> vector<8x32xf32>
    %28 = vector.broadcast %3 : vector<1x32xf32> to vector<8x32xf32>
    %29 = arith.addf %27, %28 : vector<8x32xf32>
    %30 = math.exp %29 : vector<8x32xf32>
    %cst_18 = arith.constant 1.000000e+00 : f32
    %31 = vector.broadcast %cst_18 : f32 to vector<8x32xf32>
    %32 = arith.addf %31, %30 : vector<8x32xf32>
    %cst_19 = arith.constant 1.000000e+00 : f32
    %33 = vector.broadcast %cst_19 : f32 to vector<8x32xf32>
    %34 = arith.addf %33, %30 : vector<8x32xf32>
    %35 = arith.mulf %32, %34 : vector<8x32xf32>
    %cst_20 = arith.constant 1.000000e+00 : f32
    %36 = vector.broadcast %cst_20 : f32 to vector<8x32xf32>
    %37 = arith.addf %35, %36 : vector<8x32xf32>
    %38 = tpu.reciprocal %37 {approx = true} : vector<8x32xf32> -> vector<8x32xf32>
    %cst_21 = arith.constant 2.000000e+00 : f32
    %39 = vector.broadcast %cst_21 : f32 to vector<8x32xf32>
    %40 = arith.mulf %39, %38 : vector<8x32xf32>
    %cst_22 = arith.constant 1.000000e+00 : f32
    %41 = vector.broadcast %cst_22 : f32 to vector<8x32xf32>
    %42 = arith.subf %41, %40 : vector<8x32xf32>
    %43 = arith.mulf %29, %42 : vector<8x32xf32>
    %cst_23 = arith.constant dense<0.000000e+00> : vector<8x16xf32>
    %44 = tpu.matmul %43, %4, %cst_23 {dimension_numbers = #tpu.dot_dimension_numbers<[1], [0], [0], [1], [0, 0, 1, 1], [], []>} : vector<8x32xf32>, vector<32x16xf32>, vector<8x16xf32> -> vector<8x16xf32>
    %45 = vector.broadcast %5 : vector<1x16xf32> to vector<8x16xf32>
    %46 = arith.addf %44, %45 : vector<8x16xf32>
    %cst_24 = arith.constant 1.05190957 : f32
    %47 = vector.broadcast %cst_24 : f32 to vector<8x16xf32>
    %48 = arith.mulf %47, %0 : vector<8x16xf32>
    %cst_25 = arith.constant 0.326364279 : f32
    %49 = vector.broadcast %cst_25 : f32 to vector<8x16xf32>
    %50 = arith.mulf %49, %46 : vector<8x16xf32>
    %51 = arith.subf %48, %50 : vector<8x16xf32>
    %cst_26 = arith.constant -1.000000e+00 : f32
    %cst_27 = arith.constant 1.000000e+00 : f32
    %52 = vector.broadcast %cst_26 : f32 to vector<8x16xf32>
    %53 = arith.maximumf %52, %51 : vector<8x16xf32>
    %54 = vector.broadcast %cst_27 : f32 to vector<8x16xf32>
    %55 = arith.minimumf %54, %53 : vector<8x16xf32>
    %56 = arith.select %8, %55, %51 : vector<8x16xi1>, vector<8x16xf32>
    %cst_28 = arith.constant 0.199521676 : f32
    %57 = vector.broadcast %cst_28 : f32 to vector<8x16xf32>
    %58 = arith.mulf %57, %56 : vector<8x16xf32>
    %cst_29 = arith.constant 0.800273776 : f32
    %59 = vector.broadcast %cst_29 : f32 to vector<8x16xf32>
    %60 = arith.mulf %59, %0 : vector<8x16xf32>
    %61 = arith.addf %58, %60 : vector<8x16xf32>
    %c9_30 = arith.constant 9 : index
    %c0_31 = arith.constant 0 : index
    %c0_32 = arith.constant 0 : index
    %62 = vector.load %arg1[%c9_30, %c0_31, %c0_32] : memref<10x8x16xf32, #tpu.memory_space<vmem>>, vector<1x8x16xf32>
    %63 = vector.shape_cast %62 : vector<1x8x16xf32> to vector<8x16xf32>
    %cst_33 = arith.constant 0.127153337 : f32
    %64 = vector.broadcast %cst_33 : f32 to vector<8x16xf32>
    %65 = arith.mulf %64, %63 : vector<8x16xf32>
    %66 = arith.addf %61, %65 : vector<8x16xf32>
    %cst_34 = arith.constant dense<0.000000e+00> : vector<8x32xf32>
    %67 = tpu.matmul %66, %1, %cst_34 {dimension_numbers = #tpu.dot_dimension_numbers<[1], [0], [0], [1], [0, 0, 1, 1], [], []>} : vector<8x16xf32>, vector<16x32xf32>, vector<8x32xf32> -> vector<8x32xf32>
    %c8 = arith.constant 8 : index
    %c0_35 = arith.constant 0 : index
    %68 = vector.load %arg2[%c8, %c0_35] : memref<10x32xf32, #tpu.memory_space<vmem>>, vector<1x32xf32>
    %69 = vector.broadcast %68 : vector<1x32xf32> to vector<8x32xf32>
    %70 = arith.addf %67, %69 : vector<8x32xf32>
    %71 = math.exp %70 : vector<8x32xf32>
    %cst_36 = arith.constant 1.000000e+00 : f32
    %72 = vector.broadcast %cst_36 : f32 to vector<8x32xf32>
    %73 = arith.addf %72, %71 : vector<8x32xf32>
    %cst_37 = arith.constant 1.000000e+00 : f32
    %74 = vector.broadcast %cst_37 : f32 to vector<8x32xf32>
    %75 = arith.addf %74, %71 : vector<8x32xf32>
    %76 = arith.mulf %73, %75 : vector<8x32xf32>
    %cst_38 = arith.constant 1.000000e+00 : f32
    %77 = vector.broadcast %cst_38 : f32 to vector<8x32xf32>
    %78 = arith.addf %76, %77 : vector<8x32xf32>
    %79 = tpu.reciprocal %78 {approx = true} : vector<8x32xf32> -> vector<8x32xf32>
    %cst_39 = arith.constant 2.000000e+00 : f32
    %80 = vector.broadcast %cst_39 : f32 to vector<8x32xf32>
    %81 = arith.mulf %80, %79 : vector<8x32xf32>
    %cst_40 = arith.constant 1.000000e+00 : f32
    %82 = vector.broadcast %cst_40 : f32 to vector<8x32xf32>
    %83 = arith.subf %82, %81 : vector<8x32xf32>
    %84 = arith.mulf %70, %83 : vector<8x32xf32>
    %cst_41 = arith.constant dense<0.000000e+00> : vector<8x32xf32>
    %85 = tpu.matmul %84, %2, %cst_41 {dimension_numbers = #tpu.dot_dimension_numbers<[1], [0], [0], [1], [0, 0, 1, 1], [], []>} : vector<8x32xf32>, vector<32x32xf32>, vector<8x32xf32> -> vector<8x32xf32>
    %86 = vector.broadcast %3 : vector<1x32xf32> to vector<8x32xf32>
    %87 = arith.addf %85, %86 : vector<8x32xf32>
    %88 = math.exp %87 : vector<8x32xf32>
    %cst_42 = arith.constant 1.000000e+00 : f32
    %89 = vector.broadcast %cst_42 : f32 to vector<8x32xf32>
    %90 = arith.addf %89, %88 : vector<8x32xf32>
    %cst_43 = arith.constant 1.000000e+00 : f32
    %91 = vector.broadcast %cst_43 : f32 to vector<8x32xf32>
    %92 = arith.addf %91, %88 : vector<8x32xf32>
    %93 = arith.mulf %90, %92 : vector<8x32xf32>
    %cst_44 = arith.constant 1.000000e+00 : f32
    %94 = vector.broadcast %cst_44 : f32 to vector<8x32xf32>
    %95 = arith.addf %93, %94 : vector<8x32xf32>
    %96 = tpu.reciprocal %95 {approx = true} : vector<8x32xf32> -> vector<8x32xf32>
    %cst_45 = arith.constant 2.000000e+00 : f32
    %97 = vector.broadcast %cst_45 : f32 to vector<8x32xf32>
    %98 = arith.mulf %97, %96 : vector<8x32xf32>
    %cst_46 = arith.constant 1.000000e+00 : f32
    %99 = vector.broadcast %cst_46 : f32 to vector<8x32xf32>
    %100 = arith.subf %99, %98 : vector<8x32xf32>
    %101 = arith.mulf %87, %100 : vector<8x32xf32>
    %cst_47 = arith.constant dense<0.000000e+00> : vector<8x16xf32>
    %102 = tpu.matmul %101, %4, %cst_47 {dimension_numbers = #tpu.dot_dimension_numbers<[1], [0], [0], [1], [0, 0, 1, 1], [], []>} : vector<8x32xf32>, vector<32x16xf32>, vector<8x16xf32> -> vector<8x16xf32>
    %103 = vector.broadcast %5 : vector<1x16xf32> to vector<8x16xf32>
    %104 = arith.addf %102, %103 : vector<8x16xf32>
    %cst_48 = arith.constant 1.04133725 : f32
    %105 = vector.broadcast %cst_48 : f32 to vector<8x16xf32>
    %106 = arith.mulf %105, %66 : vector<8x16xf32>
    %cst_49 = arith.constant 0.290488183 : f32
    %107 = vector.broadcast %cst_49 : f32 to vector<8x16xf32>
    %108 = arith.mulf %107, %104 : vector<8x16xf32>
    %109 = arith.subf %106, %108 : vector<8x16xf32>
    %cst_50 = arith.constant -1.000000e+00 : f32
    %cst_51 = arith.constant 1.000000e+00 : f32
    %110 = vector.broadcast %cst_50 : f32 to vector<8x16xf32>
    %111 = arith.maximumf %110, %109 : vector<8x16xf32>
    %112 = vector.broadcast %cst_51 : f32 to vector<8x16xf32>
    %113 = arith.minimumf %112, %111 : vector<8x16xf32>
    %114 = arith.select %8, %113, %109 : vector<8x16xi1>, vector<8x16xf32>
    %cst_52 = arith.constant 0.221503675 : f32
    %115 = vector.broadcast %cst_52 : f32 to vector<8x16xf32>
    %116 = arith.mulf %115, %114 : vector<8x16xf32>
    %cst_53 = arith.constant 0.778354883 : f32
    %117 = vector.broadcast %cst_53 : f32 to vector<8x16xf32>
    %118 = arith.mulf %117, %66 : vector<8x16xf32>
    %119 = arith.addf %116, %118 : vector<8x16xf32>
    %c8_54 = arith.constant 8 : index
    %c0_55 = arith.constant 0 : index
    %c0_56 = arith.constant 0 : index
    %120 = vector.load %arg1[%c8_54, %c0_55, %c0_56] : memref<10x8x16xf32, #tpu.memory_space<vmem>>, vector<1x8x16xf32>
    %121 = vector.shape_cast %120 : vector<1x8x16xf32> to vector<8x16xf32>
    %cst_57 = arith.constant 0.118198514 : f32
    %122 = vector.broadcast %cst_57 : f32 to vector<8x16xf32>
    %123 = arith.mulf %122, %121 : vector<8x16xf32>
    %124 = arith.addf %119, %123 : vector<8x16xf32>
    %cst_58 = arith.constant dense<0.000000e+00> : vector<8x32xf32>
    %125 = tpu.matmul %124, %1, %cst_58 {dimension_numbers = #tpu.dot_dimension_numbers<[1], [0], [0], [1], [0, 0, 1, 1], [], []>} : vector<8x16xf32>, vector<16x32xf32>, vector<8x32xf32> -> vector<8x32xf32>
    %c7 = arith.constant 7 : index
    %c0_59 = arith.constant 0 : index
    %126 = vector.load %arg2[%c7, %c0_59] : memref<10x32xf32, #tpu.memory_space<vmem>>, vector<1x32xf32>
    %127 = vector.broadcast %126 : vector<1x32xf32> to vector<8x32xf32>
    %128 = arith.addf %125, %127 : vector<8x32xf32>
    %129 = math.exp %128 : vector<8x32xf32>
    %cst_60 = arith.constant 1.000000e+00 : f32
    %130 = vector.broadcast %cst_60 : f32 to vector<8x32xf32>
    %131 = arith.addf %130, %129 : vector<8x32xf32>
    %cst_61 = arith.constant 1.000000e+00 : f32
    %132 = vector.broadcast %cst_61 : f32 to vector<8x32xf32>
    %133 = arith.addf %132, %129 : vector<8x32xf32>
    %134 = arith.mulf %131, %133 : vector<8x32xf32>
    %cst_62 = arith.constant 1.000000e+00 : f32
    %135 = vector.broadcast %cst_62 : f32 to vector<8x32xf32>
    %136 = arith.addf %134, %135 : vector<8x32xf32>
    %137 = tpu.reciprocal %136 {approx = true} : vector<8x32xf32> -> vector<8x32xf32>
    %cst_63 = arith.constant 2.000000e+00 : f32
    %138 = vector.broadcast %cst_63 : f32 to vector<8x32xf32>
    %139 = arith.mulf %138, %137 : vector<8x32xf32>
    %cst_64 = arith.constant 1.000000e+00 : f32
    %140 = vector.broadcast %cst_64 : f32 to vector<8x32xf32>
    %141 = arith.subf %140, %139 : vector<8x32xf32>
    %142 = arith.mulf %128, %141 : vector<8x32xf32>
    %cst_65 = arith.constant dense<0.000000e+00> : vector<8x32xf32>
    %143 = tpu.matmul %142, %2, %cst_65 {dimension_numbers = #tpu.dot_dimension_numbers<[1], [0], [0], [1], [0, 0, 1, 1], [], []>} : vector<8x32xf32>, vector<32x32xf32>, vector<8x32xf32> -> vector<8x32xf32>
    %144 = vector.broadcast %3 : vector<1x32xf32> to vector<8x32xf32>
    %145 = arith.addf %143, %144 : vector<8x32xf32>
    %146 = math.exp %145 : vector<8x32xf32>
    %cst_66 = arith.constant 1.000000e+00 : f32
    %147 = vector.broadcast %cst_66 : f32 to vector<8x32xf32>
    %148 = arith.addf %147, %146 : vector<8x32xf32>
    %cst_67 = arith.constant 1.000000e+00 : f32
    %149 = vector.broadcast %cst_67 : f32 to vector<8x32xf32>
    %150 = arith.addf %149, %146 : vector<8x32xf32>
    %151 = arith.mulf %148, %150 : vector<8x32xf32>
    %cst_68 = arith.constant 1.000000e+00 : f32
    %152 = vector.broadcast %cst_68 : f32 to vector<8x32xf32>
    %153 = arith.addf %151, %152 : vector<8x32xf32>
    %154 = tpu.reciprocal %153 {approx = true} : vector<8x32xf32> -> vector<8x32xf32>
    %cst_69 = arith.constant 2.000000e+00 : f32
    %155 = vector.broadcast %cst_69 : f32 to vector<8x32xf32>
    %156 = arith.mulf %155, %154 : vector<8x32xf32>
    %cst_70 = arith.constant 1.000000e+00 : f32
    %157 = vector.broadcast %cst_70 : f32 to vector<8x32xf32>
    %158 = arith.subf %157, %156 : vector<8x32xf32>
    %159 = arith.mulf %145, %158 : vector<8x32xf32>
    %cst_71 = arith.constant dense<0.000000e+00> : vector<8x16xf32>
    %160 = tpu.matmul %159, %4, %cst_71 {dimension_numbers = #tpu.dot_dimension_numbers<[1], [0], [0], [1], [0, 0, 1, 1], [], []>} : vector<8x32xf32>, vector<32x16xf32>, vector<8x16xf32> -> vector<8x16xf32>
    %161 = vector.broadcast %5 : vector<1x16xf32> to vector<8x16xf32>
    %162 = arith.addf %160, %161 : vector<8x16xf32>
    %cst_72 = arith.constant 1.03203368 : f32
    %163 = vector.broadcast %cst_72 : f32 to vector<8x16xf32>
    %164 = arith.mulf %163, %124 : vector<8x16xf32>
    %cst_73 = arith.constant 0.255134076 : f32
    %165 = vector.broadcast %cst_73 : f32 to vector<8x16xf32>
    %166 = arith.mulf %165, %162 : vector<8x16xf32>
    %167 = arith.subf %164, %166 : vector<8x16xf32>
    %cst_74 = arith.constant -1.000000e+00 : f32
    %cst_75 = arith.constant 1.000000e+00 : f32
    %168 = vector.broadcast %cst_74 : f32 to vector<8x16xf32>
    %169 = arith.maximumf %168, %167 : vector<8x16xf32>
    %170 = vector.broadcast %cst_75 : f32 to vector<8x16xf32>
    %171 = arith.minimumf %170, %169 : vector<8x16xf32>
    %172 = arith.select %8, %171, %167 : vector<8x16xi1>, vector<8x16xf32>
    %cst_76 = arith.constant 0.248926818 : f32
    %173 = vector.broadcast %cst_76 : f32 to vector<8x16xf32>
    %174 = arith.mulf %173, %172 : vector<8x16xf32>
    %cst_77 = arith.constant 0.750980258 : f32
    %175 = vector.broadcast %cst_77 : f32 to vector<8x16xf32>
    %176 = arith.mulf %175, %124 : vector<8x16xf32>
    %177 = arith.addf %174, %176 : vector<8x16xf32>
    %c7_78 = arith.constant 7 : index
    %c0_79 = arith.constant 0 : index
    %c0_80 = arith.constant 0 : index
    %178 = vector.load %arg1[%c7_78, %c0_79, %c0_80] : memref<10x8x16xf32, #tpu.memory_space<vmem>>, vector<1x8x16xf32>
    %179 = vector.shape_cast %178 : vector<1x8x16xf32> to vector<8x16xf32>
    %cst_81 = arith.constant 0.108585455 : f32
    %180 = vector.broadcast %cst_81 : f32 to vector<8x16xf32>
    %181 = arith.mulf %180, %179 : vector<8x16xf32>
    %182 = arith.addf %177, %181 : vector<8x16xf32>
    %cst_82 = arith.constant dense<0.000000e+00> : vector<8x32xf32>
    %183 = tpu.matmul %182, %1, %cst_82 {dimension_numbers = #tpu.dot_dimension_numbers<[1], [0], [0], [1], [0, 0, 1, 1], [], []>} : vector<8x16xf32>, vector<16x32xf32>, vector<8x32xf32> -> vector<8x32xf32>
    %c6 = arith.constant 6 : index
    %c0_83 = arith.constant 0 : index
    %184 = vector.load %arg2[%c6, %c0_83] : memref<10x32xf32, #tpu.memory_space<vmem>>, vector<1x32xf32>
    %185 = vector.broadcast %184 : vector<1x32xf32> to vector<8x32xf32>
    %186 = arith.addf %183, %185 : vector<8x32xf32>
    %187 = math.exp %186 : vector<8x32xf32>
    %cst_84 = arith.constant 1.000000e+00 : f32
    %188 = vector.broadcast %cst_84 : f32 to vector<8x32xf32>
    %189 = arith.addf %188, %187 : vector<8x32xf32>
    %cst_85 = arith.constant 1.000000e+00 : f32
    %190 = vector.broadcast %cst_85 : f32 to vector<8x32xf32>
    %191 = arith.addf %190, %187 : vector<8x32xf32>
    %192 = arith.mulf %189, %191 : vector<8x32xf32>
    %cst_86 = arith.constant 1.000000e+00 : f32
    %193 = vector.broadcast %cst_86 : f32 to vector<8x32xf32>
    %194 = arith.addf %192, %193 : vector<8x32xf32>
    %195 = tpu.reciprocal %194 {approx = true} : vector<8x32xf32> -> vector<8x32xf32>
    %cst_87 = arith.constant 2.000000e+00 : f32
    %196 = vector.broadcast %cst_87 : f32 to vector<8x32xf32>
    %197 = arith.mulf %196, %195 : vector<8x32xf32>
    %cst_88 = arith.constant 1.000000e+00 : f32
    %198 = vector.broadcast %cst_88 : f32 to vector<8x32xf32>
    %199 = arith.subf %198, %197 : vector<8x32xf32>
    %200 = arith.mulf %186, %199 : vector<8x32xf32>
    %cst_89 = arith.constant dense<0.000000e+00> : vector<8x32xf32>
    %201 = tpu.matmul %200, %2, %cst_89 {dimension_numbers = #tpu.dot_dimension_numbers<[1], [0], [0], [1], [0, 0, 1, 1], [], []>} : vector<8x32xf32>, vector<32x32xf32>, vector<8x32xf32> -> vector<8x32xf32>
    %202 = vector.broadcast %3 : vector<1x32xf32> to vector<8x32xf32>
    %203 = arith.addf %201, %202 : vector<8x32xf32>
    %204 = math.exp %203 : vector<8x32xf32>
    %cst_90 = arith.constant 1.000000e+00 : f32
    %205 = vector.broadcast %cst_90 : f32 to vector<8x32xf32>
    %206 = arith.addf %205, %204 : vector<8x32xf32>
    %cst_91 = arith.constant 1.000000e+00 : f32
    %207 = vector.broadcast %cst_91 : f32 to vector<8x32xf32>
    %208 = arith.addf %207, %204 : vector<8x32xf32>
    %209 = arith.mulf %206, %208 : vector<8x32xf32>
    %cst_92 = arith.constant 1.000000e+00 : f32
    %210 = vector.broadcast %cst_92 : f32 to vector<8x32xf32>
    %211 = arith.addf %209, %210 : vector<8x32xf32>
    %212 = tpu.reciprocal %211 {approx = true} : vector<8x32xf32> -> vector<8x32xf32>
    %cst_93 = arith.constant 2.000000e+00 : f32
    %213 = vector.broadcast %cst_93 : f32 to vector<8x32xf32>
    %214 = arith.mulf %213, %212 : vector<8x32xf32>
    %cst_94 = arith.constant 1.000000e+00 : f32
    %215 = vector.broadcast %cst_94 : f32 to vector<8x32xf32>
    %216 = arith.subf %215, %214 : vector<8x32xf32>
    %217 = arith.mulf %203, %216 : vector<8x32xf32>
    %cst_95 = arith.constant dense<0.000000e+00> : vector<8x16xf32>
    %218 = tpu.matmul %217, %4, %cst_95 {dimension_numbers = #tpu.dot_dimension_numbers<[1], [0], [0], [1], [0, 0, 1, 1], [], []>} : vector<8x32xf32>, vector<32x16xf32>, vector<8x16xf32> -> vector<8x16xf32>
    %219 = vector.broadcast %5 : vector<1x16xf32> to vector<8x16xf32>
    %220 = arith.addf %218, %219 : vector<8x16xf32>
    %cst_96 = arith.constant 1.02396369 : f32
    %221 = vector.broadcast %cst_96 : f32 to vector<8x16xf32>
    %222 = arith.mulf %221, %182 : vector<8x16xf32>
    %cst_97 = arith.constant 0.220230818 : f32
    %223 = vector.broadcast %cst_97 : f32 to vector<8x16xf32>
    %224 = arith.mulf %223, %220 : vector<8x16xf32>
    %225 = arith.subf %222, %224 : vector<8x16xf32>
    %cst_98 = arith.constant -1.000000e+00 : f32
    %cst_99 = arith.constant 1.000000e+00 : f32
    %226 = vector.broadcast %cst_98 : f32 to vector<8x16xf32>
    %227 = arith.maximumf %226, %225 : vector<8x16xf32>
    %228 = vector.broadcast %cst_99 : f32 to vector<8x16xf32>
    %229 = arith.minimumf %228, %227 : vector<8x16xf32>
    %230 = arith.select %8, %229, %225 : vector<8x16xi1>, vector<8x16xf32>
    %cst_100 = arith.constant 0.284101546 : f32
    %231 = vector.broadcast %cst_100 : f32 to vector<8x16xf32>
    %232 = arith.mulf %231, %230 : vector<8x16xf32>
    %cst_101 = arith.constant 0.715841413 : f32
    %233 = vector.broadcast %cst_101 : f32 to vector<8x16xf32>
    %234 = arith.mulf %233, %182 : vector<8x16xf32>
    %235 = arith.addf %232, %234 : vector<8x16xf32>
    %c6_102 = arith.constant 6 : index
    %c0_103 = arith.constant 0 : index
    %c0_104 = arith.constant 0 : index
    %236 = vector.load %arg1[%c6_102, %c0_103, %c0_104] : memref<10x8x16xf32, #tpu.memory_space<vmem>>, vector<1x8x16xf32>
    %237 = vector.shape_cast %236 : vector<1x8x16xf32> to vector<8x16xf32>
    %cst_105 = arith.constant 0.0981479063 : f32
    %238 = vector.broadcast %cst_105 : f32 to vector<8x16xf32>
    %239 = arith.mulf %238, %237 : vector<8x16xf32>
    %240 = arith.addf %235, %239 : vector<8x16xf32>
    %cst_106 = arith.constant dense<0.000000e+00> : vector<8x32xf32>
    %241 = tpu.matmul %240, %1, %cst_106 {dimension_numbers = #tpu.dot_dimension_numbers<[1], [0], [0], [1], [0, 0, 1, 1], [], []>} : vector<8x16xf32>, vector<16x32xf32>, vector<8x32xf32> -> vector<8x32xf32>
    %c5 = arith.constant 5 : index
    %c0_107 = arith.constant 0 : index
    %242 = vector.load %arg2[%c5, %c0_107] : memref<10x32xf32, #tpu.memory_space<vmem>>, vector<1x32xf32>
    %243 = vector.broadcast %242 : vector<1x32xf32> to vector<8x32xf32>
    %244 = arith.addf %241, %243 : vector<8x32xf32>
    %245 = math.exp %244 : vector<8x32xf32>
    %cst_108 = arith.constant 1.000000e+00 : f32
    %246 = vector.broadcast %cst_108 : f32 to vector<8x32xf32>
    %247 = arith.addf %246, %245 : vector<8x32xf32>
    %cst_109 = arith.constant 1.000000e+00 : f32
    %248 = vector.broadcast %cst_109 : f32 to vector<8x32xf32>
    %249 = arith.addf %248, %245 : vector<8x32xf32>
    %250 = arith.mulf %247, %249 : vector<8x32xf32>
    %cst_110 = arith.constant 1.000000e+00 : f32
    %251 = vector.broadcast %cst_110 : f32 to vector<8x32xf32>
    %252 = arith.addf %250, %251 : vector<8x32xf32>
    %253 = tpu.reciprocal %252 {approx = true} : vector<8x32xf32> -> vector<8x32xf32>
    %cst_111 = arith.constant 2.000000e+00 : f32
    %254 = vector.broadcast %cst_111 : f32 to vector<8x32xf32>
    %255 = arith.mulf %254, %253 : vector<8x32xf32>
    %cst_112 = arith.constant 1.000000e+00 : f32
    %256 = vector.broadcast %cst_112 : f32 to vector<8x32xf32>
    %257 = arith.subf %256, %255 : vector<8x32xf32>
    %258 = arith.mulf %244, %257 : vector<8x32xf32>
    %cst_113 = arith.constant dense<0.000000e+00> : vector<8x32xf32>
    %259 = tpu.matmul %258, %2, %cst_113 {dimension_numbers = #tpu.dot_dimension_numbers<[1], [0], [0], [1], [0, 0, 1, 1], [], []>} : vector<8x32xf32>, vector<32x32xf32>, vector<8x32xf32> -> vector<8x32xf32>
    %260 = vector.broadcast %3 : vector<1x32xf32> to vector<8x32xf32>
    %261 = arith.addf %259, %260 : vector<8x32xf32>
    %262 = math.exp %261 : vector<8x32xf32>
    %cst_114 = arith.constant 1.000000e+00 : f32
    %263 = vector.broadcast %cst_114 : f32 to vector<8x32xf32>
    %264 = arith.addf %263, %262 : vector<8x32xf32>
    %cst_115 = arith.constant 1.000000e+00 : f32
    %265 = vector.broadcast %cst_115 : f32 to vector<8x32xf32>
    %266 = arith.addf %265, %262 : vector<8x32xf32>
    %267 = arith.mulf %264, %266 : vector<8x32xf32>
    %cst_116 = arith.constant 1.000000e+00 : f32
    %268 = vector.broadcast %cst_116 : f32 to vector<8x32xf32>
    %269 = arith.addf %267, %268 : vector<8x32xf32>
    %270 = tpu.reciprocal %269 {approx = true} : vector<8x32xf32> -> vector<8x32xf32>
    %cst_117 = arith.constant 2.000000e+00 : f32
    %271 = vector.broadcast %cst_117 : f32 to vector<8x32xf32>
    %272 = arith.mulf %271, %270 : vector<8x32xf32>
    %cst_118 = arith.constant 1.000000e+00 : f32
    %273 = vector.broadcast %cst_118 : f32 to vector<8x32xf32>
    %274 = arith.subf %273, %272 : vector<8x32xf32>
    %275 = arith.mulf %261, %274 : vector<8x32xf32>
    %cst_119 = arith.constant dense<0.000000e+00> : vector<8x16xf32>
    %276 = tpu.matmul %275, %4, %cst_119 {dimension_numbers = #tpu.dot_dimension_numbers<[1], [0], [0], [1], [0, 0, 1, 1], [], []>} : vector<8x32xf32>, vector<32x16xf32>, vector<8x16xf32> -> vector<8x16xf32>
    %277 = vector.broadcast %5 : vector<1x16xf32> to vector<8x16xf32>
    %278 = arith.addf %276, %277 : vector<8x16xf32>
    %cst_120 = arith.constant 1.01709712 : f32
    %279 = vector.broadcast %cst_120 : f32 to vector<8x16xf32>
    %280 = arith.mulf %279, %240 : vector<8x16xf32>
    %cst_121 = arith.constant 0.185705796 : f32
    %281 = vector.broadcast %cst_121 : f32 to vector<8x16xf32>
    %282 = arith.mulf %281, %278 : vector<8x16xf32>
    %283 = arith.subf %280, %282 : vector<8x16xf32>
    %cst_122 = arith.constant -1.000000e+00 : f32
    %cst_123 = arith.constant 1.000000e+00 : f32
    %284 = vector.broadcast %cst_122 : f32 to vector<8x16xf32>
    %285 = arith.maximumf %284, %283 : vector<8x16xf32>
    %286 = vector.broadcast %cst_123 : f32 to vector<8x16xf32>
    %287 = arith.minimumf %286, %285 : vector<8x16xf32>
    %288 = arith.select %8, %287, %283 : vector<8x16xi1>, vector<8x16xf32>
    %cst_124 = arith.constant 0.330855787 : f32
    %289 = vector.broadcast %cst_124 : f32 to vector<8x16xf32>
    %290 = arith.mulf %289, %288 : vector<8x16xf32>
    %cst_125 = arith.constant 0.669112384 : f32
    %291 = vector.broadcast %cst_125 : f32 to vector<8x16xf32>
    %292 = arith.mulf %291, %240 : vector<8x16xf32>
    %293 = arith.addf %290, %292 : vector<8x16xf32>
    %c5_126 = arith.constant 5 : index
    %c0_127 = arith.constant 0 : index
    %c0_128 = arith.constant 0 : index
    %294 = vector.load %arg1[%c5_126, %c0_127, %c0_128] : memref<10x8x16xf32, #tpu.memory_space<vmem>>, vector<1x8x16xf32>
    %295 = vector.shape_cast %294 : vector<1x8x16xf32> to vector<8x16xf32>
    %cst_129 = arith.constant 0.0866389424 : f32
    %296 = vector.broadcast %cst_129 : f32 to vector<8x16xf32>
    %297 = arith.mulf %296, %295 : vector<8x16xf32>
    %298 = arith.addf %293, %297 : vector<8x16xf32>
    %cst_130 = arith.constant dense<0.000000e+00> : vector<8x32xf32>
    %299 = tpu.matmul %298, %1, %cst_130 {dimension_numbers = #tpu.dot_dimension_numbers<[1], [0], [0], [1], [0, 0, 1, 1], [], []>} : vector<8x16xf32>, vector<16x32xf32>, vector<8x32xf32> -> vector<8x32xf32>
    %c4 = arith.constant 4 : index
    %c0_131 = arith.constant 0 : index
    %300 = vector.load %arg2[%c4, %c0_131] : memref<10x32xf32, #tpu.memory_space<vmem>>, vector<1x32xf32>
    %301 = vector.broadcast %300 : vector<1x32xf32> to vector<8x32xf32>
    %302 = arith.addf %299, %301 : vector<8x32xf32>
    %303 = math.exp %302 : vector<8x32xf32>
    %cst_132 = arith.constant 1.000000e+00 : f32
    %304 = vector.broadcast %cst_132 : f32 to vector<8x32xf32>
    %305 = arith.addf %304, %303 : vector<8x32xf32>
    %cst_133 = arith.constant 1.000000e+00 : f32
    %306 = vector.broadcast %cst_133 : f32 to vector<8x32xf32>
    %307 = arith.addf %306, %303 : vector<8x32xf32>
    %308 = arith.mulf %305, %307 : vector<8x32xf32>
    %cst_134 = arith.constant 1.000000e+00 : f32
    %309 = vector.broadcast %cst_134 : f32 to vector<8x32xf32>
    %310 = arith.addf %308, %309 : vector<8x32xf32>
    %311 = tpu.reciprocal %310 {approx = true} : vector<8x32xf32> -> vector<8x32xf32>
    %cst_135 = arith.constant 2.000000e+00 : f32
    %312 = vector.broadcast %cst_135 : f32 to vector<8x32xf32>
    %313 = arith.mulf %312, %311 : vector<8x32xf32>
    %cst_136 = arith.constant 1.000000e+00 : f32
    %314 = vector.broadcast %cst_136 : f32 to vector<8x32xf32>
    %315 = arith.subf %314, %313 : vector<8x32xf32>
    %316 = arith.mulf %302, %315 : vector<8x32xf32>
    %cst_137 = arith.constant dense<0.000000e+00> : vector<8x32xf32>
    %317 = tpu.matmul %316, %2, %cst_137 {dimension_numbers = #tpu.dot_dimension_numbers<[1], [0], [0], [1], [0, 0, 1, 1], [], []>} : vector<8x32xf32>, vector<32x32xf32>, vector<8x32xf32> -> vector<8x32xf32>
    %318 = vector.broadcast %3 : vector<1x32xf32> to vector<8x32xf32>
    %319 = arith.addf %317, %318 : vector<8x32xf32>
    %320 = math.exp %319 : vector<8x32xf32>
    %cst_138 = arith.constant 1.000000e+00 : f32
    %321 = vector.broadcast %cst_138 : f32 to vector<8x32xf32>
    %322 = arith.addf %321, %320 : vector<8x32xf32>
    %cst_139 = arith.constant 1.000000e+00 : f32
    %323 = vector.broadcast %cst_139 : f32 to vector<8x32xf32>
    %324 = arith.addf %323, %320 : vector<8x32xf32>
    %325 = arith.mulf %322, %324 : vector<8x32xf32>
    %cst_140 = arith.constant 1.000000e+00 : f32
    %326 = vector.broadcast %cst_140 : f32 to vector<8x32xf32>
    %327 = arith.addf %325, %326 : vector<8x32xf32>
    %328 = tpu.reciprocal %327 {approx = true} : vector<8x32xf32> -> vector<8x32xf32>
    %cst_141 = arith.constant 2.000000e+00 : f32
    %329 = vector.broadcast %cst_141 : f32 to vector<8x32xf32>
    %330 = arith.mulf %329, %328 : vector<8x32xf32>
    %cst_142 = arith.constant 1.000000e+00 : f32
    %331 = vector.broadcast %cst_142 : f32 to vector<8x32xf32>
    %332 = arith.subf %331, %330 : vector<8x32xf32>
    %333 = arith.mulf %319, %332 : vector<8x32xf32>
    %cst_143 = arith.constant dense<0.000000e+00> : vector<8x16xf32>
    %334 = tpu.matmul %333, %4, %cst_143 {dimension_numbers = #tpu.dot_dimension_numbers<[1], [0], [0], [1], [0, 0, 1, 1], [], []>} : vector<8x32xf32>, vector<32x16xf32>, vector<8x16xf32> -> vector<8x16xf32>
    %335 = vector.broadcast %5 : vector<1x16xf32> to vector<8x16xf32>
    %336 = arith.addf %334, %335 : vector<8x16xf32>
    %cst_144 = arith.constant 1.01140809 : f32
    %337 = vector.broadcast %cst_144 : f32 to vector<8x16xf32>
    %338 = arith.mulf %337, %298 : vector<8x16xf32>
    %cst_145 = arith.constant 0.151480585 : f32
    %339 = vector.broadcast %cst_145 : f32 to vector<8x16xf32>
    %340 = arith.mulf %339, %336 : vector<8x16xf32>
    %341 = arith.subf %338, %340 : vector<8x16xf32>
    %cst_146 = arith.constant -1.000000e+00 : f32
    %cst_147 = arith.constant 1.000000e+00 : f32
    %342 = vector.broadcast %cst_146 : f32 to vector<8x16xf32>
    %343 = arith.maximumf %342, %341 : vector<8x16xf32>
    %344 = vector.broadcast %cst_147 : f32 to vector<8x16xf32>
    %345 = arith.minimumf %344, %343 : vector<8x16xf32>
    %346 = arith.select %8, %345, %341 : vector<8x16xi1>, vector<8x16xf32>
    %cst_148 = arith.constant 0.396019757 : f32
    %347 = vector.broadcast %cst_148 : f32 to vector<8x16xf32>
    %348 = arith.mulf %347, %346 : vector<8x16xf32>
    %cst_149 = arith.constant 0.603964865 : f32
    %349 = vector.broadcast %cst_149 : f32 to vector<8x16xf32>
    %350 = arith.mulf %349, %298 : vector<8x16xf32>
    %351 = arith.addf %348, %350 : vector<8x16xf32>
    %c4_150 = arith.constant 4 : index
    %c0_151 = arith.constant 0 : index
    %c0_152 = arith.constant 0 : index
    %352 = vector.load %arg1[%c4_150, %c0_151, %c0_152] : memref<10x8x16xf32, #tpu.memory_space<vmem>>, vector<1x8x16xf32>
    %353 = vector.shape_cast %352 : vector<1x8x16xf32> to vector<8x16xf32>
    %cst_153 = arith.constant 0.0736644641 : f32
    %354 = vector.broadcast %cst_153 : f32 to vector<8x16xf32>
    %355 = arith.mulf %354, %353 : vector<8x16xf32>
    %356 = arith.addf %351, %355 : vector<8x16xf32>
    %cst_154 = arith.constant dense<0.000000e+00> : vector<8x32xf32>
    %357 = tpu.matmul %356, %1, %cst_154 {dimension_numbers = #tpu.dot_dimension_numbers<[1], [0], [0], [1], [0, 0, 1, 1], [], []>} : vector<8x16xf32>, vector<16x32xf32>, vector<8x32xf32> -> vector<8x32xf32>
    %c3 = arith.constant 3 : index
    %c0_155 = arith.constant 0 : index
    %358 = vector.load %arg2[%c3, %c0_155] : memref<10x32xf32, #tpu.memory_space<vmem>>, vector<1x32xf32>
    %359 = vector.broadcast %358 : vector<1x32xf32> to vector<8x32xf32>
    %360 = arith.addf %357, %359 : vector<8x32xf32>
    %361 = math.exp %360 : vector<8x32xf32>
    %cst_156 = arith.constant 1.000000e+00 : f32
    %362 = vector.broadcast %cst_156 : f32 to vector<8x32xf32>
    %363 = arith.addf %362, %361 : vector<8x32xf32>
    %cst_157 = arith.constant 1.000000e+00 : f32
    %364 = vector.broadcast %cst_157 : f32 to vector<8x32xf32>
    %365 = arith.addf %364, %361 : vector<8x32xf32>
    %366 = arith.mulf %363, %365 : vector<8x32xf32>
    %cst_158 = arith.constant 1.000000e+00 : f32
    %367 = vector.broadcast %cst_158 : f32 to vector<8x32xf32>
    %368 = arith.addf %366, %367 : vector<8x32xf32>
    %369 = tpu.reciprocal %368 {approx = true} : vector<8x32xf32> -> vector<8x32xf32>
    %cst_159 = arith.constant 2.000000e+00 : f32
    %370 = vector.broadcast %cst_159 : f32 to vector<8x32xf32>
    %371 = arith.mulf %370, %369 : vector<8x32xf32>
    %cst_160 = arith.constant 1.000000e+00 : f32
    %372 = vector.broadcast %cst_160 : f32 to vector<8x32xf32>
    %373 = arith.subf %372, %371 : vector<8x32xf32>
    %374 = arith.mulf %360, %373 : vector<8x32xf32>
    %cst_161 = arith.constant dense<0.000000e+00> : vector<8x32xf32>
    %375 = tpu.matmul %374, %2, %cst_161 {dimension_numbers = #tpu.dot_dimension_numbers<[1], [0], [0], [1], [0, 0, 1, 1], [], []>} : vector<8x32xf32>, vector<32x32xf32>, vector<8x32xf32> -> vector<8x32xf32>
    %376 = vector.broadcast %3 : vector<1x32xf32> to vector<8x32xf32>
    %377 = arith.addf %375, %376 : vector<8x32xf32>
    %378 = math.exp %377 : vector<8x32xf32>
    %cst_162 = arith.constant 1.000000e+00 : f32
    %379 = vector.broadcast %cst_162 : f32 to vector<8x32xf32>
    %380 = arith.addf %379, %378 : vector<8x32xf32>
    %cst_163 = arith.constant 1.000000e+00 : f32
    %381 = vector.broadcast %cst_163 : f32 to vector<8x32xf32>
    %382 = arith.addf %381, %378 : vector<8x32xf32>
    %383 = arith.mulf %380, %382 : vector<8x32xf32>
    %cst_164 = arith.constant 1.000000e+00 : f32
    %384 = vector.broadcast %cst_164 : f32 to vector<8x32xf32>
    %385 = arith.addf %383, %384 : vector<8x32xf32>
    %386 = tpu.reciprocal %385 {approx = true} : vector<8x32xf32> -> vector<8x32xf32>
    %cst_165 = arith.constant 2.000000e+00 : f32
    %387 = vector.broadcast %cst_165 : f32 to vector<8x32xf32>
    %388 = arith.mulf %387, %386 : vector<8x32xf32>
    %cst_166 = arith.constant 1.000000e+00 : f32
    %389 = vector.broadcast %cst_166 : f32 to vector<8x32xf32>
    %390 = arith.subf %389, %388 : vector<8x32xf32>
    %391 = arith.mulf %377, %390 : vector<8x32xf32>
    %cst_167 = arith.constant dense<0.000000e+00> : vector<8x16xf32>
    %392 = tpu.matmul %391, %4, %cst_167 {dimension_numbers = #tpu.dot_dimension_numbers<[1], [0], [0], [1], [0, 0, 1, 1], [], []>} : vector<8x32xf32>, vector<32x16xf32>, vector<8x16xf32> -> vector<8x16xf32>
    %393 = vector.broadcast %5 : vector<1x16xf32> to vector<8x16xf32>
    %394 = arith.addf %392, %393 : vector<8x16xf32>
    %cst_168 = arith.constant 1.00687468 : f32
    %395 = vector.broadcast %cst_168 : f32 to vector<8x16xf32>
    %396 = arith.mulf %395, %356 : vector<8x16xf32>
    %cst_169 = arith.constant 0.117459275 : f32
    %397 = vector.broadcast %cst_169 : f32 to vector<8x16xf32>
    %398 = arith.mulf %397, %394 : vector<8x16xf32>
    %399 = arith.subf %396, %398 : vector<8x16xf32>
    %cst_170 = arith.constant -1.000000e+00 : f32
    %cst_171 = arith.constant 1.000000e+00 : f32
    %400 = vector.broadcast %cst_170 : f32 to vector<8x16xf32>
    %401 = arith.maximumf %400, %399 : vector<8x16xf32>
    %402 = vector.broadcast %cst_171 : f32 to vector<8x16xf32>
    %403 = arith.minimumf %402, %401 : vector<8x16xf32>
    %404 = arith.select %8, %403, %399 : vector<8x16xi1>, vector<8x16xf32>
    %cst_172 = arith.constant 0.493057966 : f32
    %405 = vector.broadcast %cst_172 : f32 to vector<8x16xf32>
    %406 = arith.mulf %405, %404 : vector<8x16xf32>
    %cst_173 = arith.constant 0.506936193 : f32
    %407 = vector.broadcast %cst_173 : f32 to vector<8x16xf32>
    %408 = arith.mulf %407, %356 : vector<8x16xf32>
    %409 = arith.addf %406, %408 : vector<8x16xf32>
    %c3_174 = arith.constant 3 : index
    %c0_175 = arith.constant 0 : index
    %c0_176 = arith.constant 0 : index
    %410 = vector.load %arg1[%c3_174, %c0_175, %c0_176] : memref<10x8x16xf32, #tpu.memory_space<vmem>>, vector<1x8x16xf32>
    %411 = vector.shape_cast %410 : vector<1x8x16xf32> to vector<8x16xf32>
    %cst_177 = arith.constant 0.0585228167 : f32
    %412 = vector.broadcast %cst_177 : f32 to vector<8x16xf32>
    %413 = arith.mulf %412, %411 : vector<8x16xf32>
    %414 = arith.addf %409, %413 : vector<8x16xf32>
    %cst_178 = arith.constant dense<0.000000e+00> : vector<8x32xf32>
    %415 = tpu.matmul %414, %1, %cst_178 {dimension_numbers = #tpu.dot_dimension_numbers<[1], [0], [0], [1], [0, 0, 1, 1], [], []>} : vector<8x16xf32>, vector<16x32xf32>, vector<8x32xf32> -> vector<8x32xf32>
    %c2 = arith.constant 2 : index
    %c0_179 = arith.constant 0 : index
    %416 = vector.load %arg2[%c2, %c0_179] : memref<10x32xf32, #tpu.memory_space<vmem>>, vector<1x32xf32>
    %417 = vector.broadcast %416 : vector<1x32xf32> to vector<8x32xf32>
    %418 = arith.addf %415, %417 : vector<8x32xf32>
    %419 = math.exp %418 : vector<8x32xf32>
    %cst_180 = arith.constant 1.000000e+00 : f32
    %420 = vector.broadcast %cst_180 : f32 to vector<8x32xf32>
    %421 = arith.addf %420, %419 : vector<8x32xf32>
    %cst_181 = arith.constant 1.000000e+00 : f32
    %422 = vector.broadcast %cst_181 : f32 to vector<8x32xf32>
    %423 = arith.addf %422, %419 : vector<8x32xf32>
    %424 = arith.mulf %421, %423 : vector<8x32xf32>
    %cst_182 = arith.constant 1.000000e+00 : f32
    %425 = vector.broadcast %cst_182 : f32 to vector<8x32xf32>
    %426 = arith.addf %424, %425 : vector<8x32xf32>
    %427 = tpu.reciprocal %426 {approx = true} : vector<8x32xf32> -> vector<8x32xf32>
    %cst_183 = arith.constant 2.000000e+00 : f32
    %428 = vector.broadcast %cst_183 : f32 to vector<8x32xf32>
    %429 = arith.mulf %428, %427 : vector<8x32xf32>
    %cst_184 = arith.constant 1.000000e+00 : f32
    %430 = vector.broadcast %cst_184 : f32 to vector<8x32xf32>
    %431 = arith.subf %430, %429 : vector<8x32xf32>
    %432 = arith.mulf %418, %431 : vector<8x32xf32>
    %cst_185 = arith.constant dense<0.000000e+00> : vector<8x32xf32>
    %433 = tpu.matmul %432, %2, %cst_185 {dimension_numbers = #tpu.dot_dimension_numbers<[1], [0], [0], [1], [0, 0, 1, 1], [], []>} : vector<8x32xf32>, vector<32x32xf32>, vector<8x32xf32> -> vector<8x32xf32>
    %434 = vector.broadcast %3 : vector<1x32xf32> to vector<8x32xf32>
    %435 = arith.addf %433, %434 : vector<8x32xf32>
    %436 = math.exp %435 : vector<8x32xf32>
    %cst_186 = arith.constant 1.000000e+00 : f32
    %437 = vector.broadcast %cst_186 : f32 to vector<8x32xf32>
    %438 = arith.addf %437, %436 : vector<8x32xf32>
    %cst_187 = arith.constant 1.000000e+00 : f32
    %439 = vector.broadcast %cst_187 : f32 to vector<8x32xf32>
    %440 = arith.addf %439, %436 : vector<8x32xf32>
    %441 = arith.mulf %438, %440 : vector<8x32xf32>
    %cst_188 = arith.constant 1.000000e+00 : f32
    %442 = vector.broadcast %cst_188 : f32 to vector<8x32xf32>
    %443 = arith.addf %441, %442 : vector<8x32xf32>
    %444 = tpu.reciprocal %443 {approx = true} : vector<8x32xf32> -> vector<8x32xf32>
    %cst_189 = arith.constant 2.000000e+00 : f32
    %445 = vector.broadcast %cst_189 : f32 to vector<8x32xf32>
    %446 = arith.mulf %445, %444 : vector<8x32xf32>
    %cst_190 = arith.constant 1.000000e+00 : f32
    %447 = vector.broadcast %cst_190 : f32 to vector<8x32xf32>
    %448 = arith.subf %447, %446 : vector<8x32xf32>
    %449 = arith.mulf %435, %448 : vector<8x32xf32>
    %cst_191 = arith.constant dense<0.000000e+00> : vector<8x16xf32>
    %450 = tpu.matmul %449, %4, %cst_191 {dimension_numbers = #tpu.dot_dimension_numbers<[1], [0], [0], [1], [0, 0, 1, 1], [], []>} : vector<8x32xf32>, vector<32x16xf32>, vector<8x16xf32> -> vector<8x16xf32>
    %451 = vector.broadcast %5 : vector<1x16xf32> to vector<8x16xf32>
    %452 = arith.addf %450, %451 : vector<8x16xf32>
    %cst_192 = arith.constant 1.00347912 : f32
    %453 = vector.broadcast %cst_192 : f32 to vector<8x16xf32>
    %454 = arith.mulf %453, %414 : vector<8x16xf32>
    %cst_193 = arith.constant 0.0834892243 : f32
    %455 = vector.broadcast %cst_193 : f32 to vector<8x16xf32>
    %456 = arith.mulf %455, %452 : vector<8x16xf32>
    %457 = arith.subf %454, %456 : vector<8x16xf32>
    %cst_194 = arith.constant -1.000000e+00 : f32
    %cst_195 = arith.constant 1.000000e+00 : f32
    %458 = vector.broadcast %cst_194 : f32 to vector<8x16xf32>
    %459 = arith.maximumf %458, %457 : vector<8x16xf32>
    %460 = vector.broadcast %cst_195 : f32 to vector<8x16xf32>
    %461 = arith.minimumf %460, %459 : vector<8x16xf32>
    %462 = arith.select %8, %461, %457 : vector<8x16xi1>, vector<8x16xf32>
    %cst_196 = arith.constant 0.652504683 : f32
    %463 = vector.broadcast %cst_196 : f32 to vector<8x16xf32>
    %464 = arith.mulf %463, %462 : vector<8x16xf32>
    %cst_197 = arith.constant 0.347493947 : f32
    %465 = vector.broadcast %cst_197 : f32 to vector<8x16xf32>
    %466 = arith.mulf %465, %414 : vector<8x16xf32>
    %467 = arith.addf %464, %466 : vector<8x16xf32>
    %c2_198 = arith.constant 2 : index
    %c0_199 = arith.constant 0 : index
    %c0_200 = arith.constant 0 : index
    %468 = vector.load %arg1[%c2_198, %c0_199, %c0_200] : memref<10x8x16xf32, #tpu.memory_space<vmem>>, vector<1x8x16xf32>
    %469 = vector.shape_cast %468 : vector<1x8x16xf32> to vector<8x16xf32>
    %cst_201 = arith.constant 0.0396863967 : f32
    %470 = vector.broadcast %cst_201 : f32 to vector<8x16xf32>
    %471 = arith.mulf %470, %469 : vector<8x16xf32>
    %472 = arith.addf %467, %471 : vector<8x16xf32>
    %cst_202 = arith.constant dense<0.000000e+00> : vector<8x32xf32>
    %473 = tpu.matmul %472, %1, %cst_202 {dimension_numbers = #tpu.dot_dimension_numbers<[1], [0], [0], [1], [0, 0, 1, 1], [], []>} : vector<8x16xf32>, vector<16x32xf32>, vector<8x32xf32> -> vector<8x32xf32>
    %c1 = arith.constant 1 : index
    %c0_203 = arith.constant 0 : index
    %474 = vector.load %arg2[%c1, %c0_203] : memref<10x32xf32, #tpu.memory_space<vmem>>, vector<1x32xf32>
    %475 = vector.broadcast %474 : vector<1x32xf32> to vector<8x32xf32>
    %476 = arith.addf %473, %475 : vector<8x32xf32>
    %477 = math.exp %476 : vector<8x32xf32>
    %cst_204 = arith.constant 1.000000e+00 : f32
    %478 = vector.broadcast %cst_204 : f32 to vector<8x32xf32>
    %479 = arith.addf %478, %477 : vector<8x32xf32>
    %cst_205 = arith.constant 1.000000e+00 : f32
    %480 = vector.broadcast %cst_205 : f32 to vector<8x32xf32>
    %481 = arith.addf %480, %477 : vector<8x32xf32>
    %482 = arith.mulf %479, %481 : vector<8x32xf32>
    %cst_206 = arith.constant 1.000000e+00 : f32
    %483 = vector.broadcast %cst_206 : f32 to vector<8x32xf32>
    %484 = arith.addf %482, %483 : vector<8x32xf32>
    %485 = tpu.reciprocal %484 {approx = true} : vector<8x32xf32> -> vector<8x32xf32>
    %cst_207 = arith.constant 2.000000e+00 : f32
    %486 = vector.broadcast %cst_207 : f32 to vector<8x32xf32>
    %487 = arith.mulf %486, %485 : vector<8x32xf32>
    %cst_208 = arith.constant 1.000000e+00 : f32
    %488 = vector.broadcast %cst_208 : f32 to vector<8x32xf32>
    %489 = arith.subf %488, %487 : vector<8x32xf32>
    %490 = arith.mulf %476, %489 : vector<8x32xf32>
    %cst_209 = arith.constant dense<0.000000e+00> : vector<8x32xf32>
    %491 = tpu.matmul %490, %2, %cst_209 {dimension_numbers = #tpu.dot_dimension_numbers<[1], [0], [0], [1], [0, 0, 1, 1], [], []>} : vector<8x32xf32>, vector<32x32xf32>, vector<8x32xf32> -> vector<8x32xf32>
    %492 = vector.broadcast %3 : vector<1x32xf32> to vector<8x32xf32>
    %493 = arith.addf %491, %492 : vector<8x32xf32>
    %494 = math.exp %493 : vector<8x32xf32>
    %cst_210 = arith.constant 1.000000e+00 : f32
    %495 = vector.broadcast %cst_210 : f32 to vector<8x32xf32>
    %496 = arith.addf %495, %494 : vector<8x32xf32>
    %cst_211 = arith.constant 1.000000e+00 : f32
    %497 = vector.broadcast %cst_211 : f32 to vector<8x32xf32>
    %498 = arith.addf %497, %494 : vector<8x32xf32>
    %499 = arith.mulf %496, %498 : vector<8x32xf32>
    %cst_212 = arith.constant 1.000000e+00 : f32
    %500 = vector.broadcast %cst_212 : f32 to vector<8x32xf32>
    %501 = arith.addf %499, %500 : vector<8x32xf32>
    %502 = tpu.reciprocal %501 {approx = true} : vector<8x32xf32> -> vector<8x32xf32>
    %cst_213 = arith.constant 2.000000e+00 : f32
    %503 = vector.broadcast %cst_213 : f32 to vector<8x32xf32>
    %504 = arith.mulf %503, %502 : vector<8x32xf32>
    %cst_214 = arith.constant 1.000000e+00 : f32
    %505 = vector.broadcast %cst_214 : f32 to vector<8x32xf32>
    %506 = arith.subf %505, %504 : vector<8x32xf32>
    %507 = arith.mulf %493, %506 : vector<8x32xf32>
    %cst_215 = arith.constant dense<0.000000e+00> : vector<8x16xf32>
    %508 = tpu.matmul %507, %4, %cst_215 {dimension_numbers = #tpu.dot_dimension_numbers<[1], [0], [0], [1], [0, 0, 1, 1], [], []>} : vector<8x32xf32>, vector<32x16xf32>, vector<8x16xf32> -> vector<8x16xf32>
    %509 = vector.broadcast %5 : vector<1x16xf32> to vector<8x16xf32>
    %510 = arith.addf %508, %509 : vector<8x16xf32>
    %cst_216 = arith.constant 1.00120759 : f32
    %511 = vector.broadcast %cst_216 : f32 to vector<8x16xf32>
    %512 = arith.mulf %511, %472 : vector<8x16xf32>
    %cst_217 = arith.constant 0.0491600074 : f32
    %513 = vector.broadcast %cst_217 : f32 to vector<8x16xf32>
    %514 = arith.mulf %513, %510 : vector<8x16xf32>
    %515 = arith.subf %512, %514 : vector<8x16xf32>
    %cst_218 = arith.constant -1.000000e+00 : f32
    %cst_219 = arith.constant 1.000000e+00 : f32
    %516 = vector.broadcast %cst_218 : f32 to vector<8x16xf32>
    %517 = arith.maximumf %516, %515 : vector<8x16xf32>
    %518 = vector.broadcast %cst_219 : f32 to vector<8x16xf32>
    %519 = arith.minimumf %518, %517 : vector<8x16xf32>
    %520 = arith.select %8, %519, %515 : vector<8x16xi1>, vector<8x16xf32>
    %cst_220 = arith.constant 0.958569288 : f32
    %521 = vector.broadcast %cst_220 : f32 to vector<8x16xf32>
    %522 = arith.mulf %521, %520 : vector<8x16xf32>
    %cst_221 = arith.constant 0.0414306708 : f32
    %523 = vector.broadcast %cst_221 : f32 to vector<8x16xf32>
    %524 = arith.mulf %523, %472 : vector<8x16xf32>
    %525 = arith.addf %522, %524 : vector<8x16xf32>
    %c1_222 = arith.constant 1 : index
    %c0_223 = arith.constant 0 : index
    %c0_224 = arith.constant 0 : index
    %526 = vector.load %arg1[%c1_222, %c0_223, %c0_224] : memref<10x8x16xf32, #tpu.memory_space<vmem>>, vector<1x8x16xf32>
    %527 = vector.shape_cast %526 : vector<1x8x16xf32> to vector<8x16xf32>
    %cst_225 = arith.constant 9.790900e-03 : f32
    %528 = vector.broadcast %cst_225 : f32 to vector<8x16xf32>
    %529 = arith.mulf %528, %527 : vector<8x16xf32>
    %530 = arith.addf %525, %529 : vector<8x16xf32>
    %cst_226 = arith.constant dense<0.000000e+00> : vector<8x32xf32>
    %531 = tpu.matmul %530, %1, %cst_226 {dimension_numbers = #tpu.dot_dimension_numbers<[1], [0], [0], [1], [0, 0, 1, 1], [], []>} : vector<8x16xf32>, vector<16x32xf32>, vector<8x32xf32> -> vector<8x32xf32>
    %c0_227 = arith.constant 0 : index
    %c0_228 = arith.constant 0 : index
    %532 = vector.load %arg2[%c0_227, %c0_228] : memref<10x32xf32, #tpu.memory_space<vmem>>, vector<1x32xf32>
    %533 = vector.broadcast %532 : vector<1x32xf32> to vector<8x32xf32>
    %534 = arith.addf %531, %533 : vector<8x32xf32>
    %535 = math.exp %534 : vector<8x32xf32>
    %cst_229 = arith.constant 1.000000e+00 : f32
    %536 = vector.broadcast %cst_229 : f32 to vector<8x32xf32>
    %537 = arith.addf %536, %535 : vector<8x32xf32>
    %cst_230 = arith.constant 1.000000e+00 : f32
    %538 = vector.broadcast %cst_230 : f32 to vector<8x32xf32>
    %539 = arith.addf %538, %535 : vector<8x32xf32>
    %540 = arith.mulf %537, %539 : vector<8x32xf32>
    %cst_231 = arith.constant 1.000000e+00 : f32
    %541 = vector.broadcast %cst_231 : f32 to vector<8x32xf32>
    %542 = arith.addf %540, %541 : vector<8x32xf32>
    %543 = tpu.reciprocal %542 {approx = true} : vector<8x32xf32> -> vector<8x32xf32>
    %cst_232 = arith.constant 2.000000e+00 : f32
    %544 = vector.broadcast %cst_232 : f32 to vector<8x32xf32>
    %545 = arith.mulf %544, %543 : vector<8x32xf32>
    %cst_233 = arith.constant 1.000000e+00 : f32
    %546 = vector.broadcast %cst_233 : f32 to vector<8x32xf32>
    %547 = arith.subf %546, %545 : vector<8x32xf32>
    %548 = arith.mulf %534, %547 : vector<8x32xf32>
    %cst_234 = arith.constant dense<0.000000e+00> : vector<8x32xf32>
    %549 = tpu.matmul %548, %2, %cst_234 {dimension_numbers = #tpu.dot_dimension_numbers<[1], [0], [0], [1], [0, 0, 1, 1], [], []>} : vector<8x32xf32>, vector<32x32xf32>, vector<8x32xf32> -> vector<8x32xf32>
    %550 = vector.broadcast %3 : vector<1x32xf32> to vector<8x32xf32>
    %551 = arith.addf %549, %550 : vector<8x32xf32>
    %552 = math.exp %551 : vector<8x32xf32>
    %cst_235 = arith.constant 1.000000e+00 : f32
    %553 = vector.broadcast %cst_235 : f32 to vector<8x32xf32>
    %554 = arith.addf %553, %552 : vector<8x32xf32>
    %cst_236 = arith.constant 1.000000e+00 : f32
    %555 = vector.broadcast %cst_236 : f32 to vector<8x32xf32>
    %556 = arith.addf %555, %552 : vector<8x32xf32>
    %557 = arith.mulf %554, %556 : vector<8x32xf32>
    %cst_237 = arith.constant 1.000000e+00 : f32
    %558 = vector.broadcast %cst_237 : f32 to vector<8x32xf32>
    %559 = arith.addf %557, %558 : vector<8x32xf32>
    %560 = tpu.reciprocal %559 {approx = true} : vector<8x32xf32> -> vector<8x32xf32>
    %cst_238 = arith.constant 2.000000e+00 : f32
    %561 = vector.broadcast %cst_238 : f32 to vector<8x32xf32>
    %562 = arith.mulf %561, %560 : vector<8x32xf32>
    %cst_239 = arith.constant 1.000000e+00 : f32
    %563 = vector.broadcast %cst_239 : f32 to vector<8x32xf32>
    %564 = arith.subf %563, %562 : vector<8x32xf32>
    %565 = arith.mulf %551, %564 : vector<8x32xf32>
    %cst_240 = arith.constant dense<0.000000e+00> : vector<8x16xf32>
    %566 = tpu.matmul %565, %4, %cst_240 {dimension_numbers = #tpu.dot_dimension_numbers<[1], [0], [0], [1], [0, 0, 1, 1], [], []>} : vector<8x32xf32>, vector<32x16xf32>, vector<8x16xf32> -> vector<8x16xf32>
    %567 = vector.broadcast %5 : vector<1x16xf32> to vector<8x16xf32>
    %568 = arith.addf %566, %567 : vector<8x16xf32>
    %cst_241 = arith.constant 1.000050e+00 : f32
    %569 = vector.broadcast %cst_241 : f32 to vector<8x16xf32>
    %570 = arith.mulf %569, %530 : vector<8x16xf32>
    %cst_242 = arith.constant 1.000050e-02 : f32
    %571 = vector.broadcast %cst_242 : f32 to vector<8x16xf32>
    %572 = arith.mulf %571, %568 : vector<8x16xf32>
    %573 = arith.subf %570, %572 : vector<8x16xf32>
    %cst_243 = arith.constant -1.000000e+00 : f32
    %cst_244 = arith.constant 1.000000e+00 : f32
    %574 = vector.broadcast %cst_243 : f32 to vector<8x16xf32>
    %575 = arith.maximumf %574, %573 : vector<8x16xf32>
    %576 = vector.broadcast %cst_244 : f32 to vector<8x16xf32>
    %577 = arith.minimumf %576, %575 : vector<8x16xf32>
    %578 = arith.select %8, %577, %573 : vector<8x16xi1>, vector<8x16xf32>
    %cst_245 = arith.constant 1.000000e+00 : f32
    %579 = vector.broadcast %cst_245 : f32 to vector<8x16xf32>
    %580 = arith.mulf %579, %578 : vector<8x16xf32>
    %cst_246 = arith.constant 0.000000e+00 : f32
    %581 = vector.broadcast %cst_246 : f32 to vector<8x16xf32>
    %582 = arith.mulf %581, %530 : vector<8x16xf32>
    %583 = arith.addf %580, %582 : vector<8x16xf32>
    %cst_247 = arith.constant -1.000000e+00 : f32
    %cst_248 = arith.constant 1.000000e+00 : f32
    %584 = vector.broadcast %cst_247 : f32 to vector<8x16xf32>
    %585 = arith.maximumf %584, %583 : vector<8x16xf32>
    %586 = vector.broadcast %cst_248 : f32 to vector<8x16xf32>
    %587 = arith.minimumf %586, %585 : vector<8x16xf32>
    %588 = arith.select %8, %587, %583 : vector<8x16xi1>, vector<8x16xf32>
    %c0_249 = arith.constant 0 : index
    %c0_250 = arith.constant 0 : index
    %589 = vector.load %arg8[%c0_249, %c0_250] : memref<8x16xf32, #tpu.memory_space<vmem>>, vector<8x16xf32>
    tpu.vector_store %arg8[%c0_249, %c0_250], %588 {strides = array<i32>} : memref<8x16xf32, #tpu.memory_space<vmem>>, vector<8x16xf32>,
    return
  }
}

</mosaic_0001>

<bundles_post_ra>
// kernel: tpu_custom_call.1
= control target key start
LH: loop header
LB: loop body
LE: loop exit
PB: predicated region body
PF: predicated region fallthrough
CT: control target
= control target key end

     0   :  { %13 = vsyncpa [#allocation3], 0  ;;  %s3903_s0 = inlined_call_operand.hbm [shape: f32[8,16], index: 0, kind: input, shape index: {}]   ;;  %s3904_s1 = inlined_call_operand.hbm [shape: f32[10,8,16], index: 1, kind: input, shape index: {}]   ;;  %s3905_s2 = inlined_call_operand.vmem [shape: f32[10,32], index: 2, kind: input, shape index: {}]   ;;  %s3906_s3 = inlined_call_operand.hbm [shape: f32[16,32], index: 3, kind: input, shape index: {}]   ;;  %s3907_s4 = inlined_call_operand.vmem [shape: f32[32,32], index: 4, kind: input, shape index: {}]   ;;  %s3908_s5 = inlined_call_operand.vmem [shape: f32[1,32], index: 5, kind: input, shape index: {}]   ;;  %s3909_s6 = inlined_call_operand.vmem [shape: f32[32,16], index: 6, kind: input, shape index: {}]   ;;  %s3910_s7 = inlined_call_operand.vmem [shape: f32[1,16], index: 7, kind: input, shape index: {}]   ;;  %s3911_s8 = inlined_call_operand.hbm [shape: f32[8,16], index: 8, kind: output, shape index: {}]  }
   0x1   :  { %14 = vsyncpa [#allocation6], 0 }
   0x2   :  { %15 = vsyncpa [#allocation4], 0  ;;  %s3323_s27 = smov [#allocation5]  }
   0x3   :  { %s31_s28 = sshll.u32 %s3323_s27, 4  ;;  %s32_s28 = int_to_ptr.vmem [resolvable:$true] %s31_s28 }
   0x4   :  { %s3245_s29 = scalar_lea.vmem %s32_s28, 1280  ;;  %p3250_p1 = scmp.lt.s32.totalorder %s32_s28, %s32_s28 }
   0x5   :  { %p3246_p0 = scmp.ne.s32.totalorder %s32_s28, %s3245_s29  ;;  %p3251_p2 = scmp.lt.s32.totalorder %s3245_s29, %s3245_s29 }
   0x7   :  { %p3252_p3 = por %p3251_p2, %p3250_p1 }
   0x9   :  { %p3253_p4 = pnand %p3252_p3, %p3246_p0 }
   0xb   :  { %3256 = shalt.err (!%p3253_p4)
}
   0xc   :  { %s3324_s30 = smov 128   ;;  %s3325_s9 = smov 8  }
   0xd   :  { %37 = dma.hbm_to_vmem [thread:$0]  %s3904_s1, 1280, %s32_s28, [#allocation6], %s3324_s30, %s3324_s30, %s3325_s9  }
   0xe   :  { %s3326_s12 = smov [#allocation2]   ;;  %s3327_s14 = smov [#allocation7]  }
   0xf   :  { %s22_s13 = sshll.u32 %s3326_s12, 4  ;;  %s45_s15 = sshll.u32 %s3327_s14, 4  ;;  %s23_s13 = int_to_ptr.vmem [resolvable:$true] %s22_s13  ;;  %s46_s15 = int_to_ptr.vmem [resolvable:$true] %s45_s15 }
  0x10   :  { %s3265_s16 = scalar_lea.vmem %s23_s13, 128  ;;  %p3270_p6 = scmp.lt.s32.totalorder %s23_s13, %s23_s13 }
  0x11   :  { %p3266_p5 = scmp.ne.s32.totalorder %s23_s13, %s3265_s16  ;;  %p3271_p7 = scmp.lt.s32.totalorder %s3265_s16, %s3265_s16 }
  0x13   :  { %p3272_p8 = por %p3271_p7, %p3270_p6 }
  0x15   :  { %p3273_p9 = pnand %p3272_p8, %p3266_p5 }
  0x17   :  { %3276 = shalt.err (!%p3273_p9)
}
  0x18   :  { %25 = dma.hbm_to_vmem [thread:$0]  %s3903_s0, 128, %s23_s13, [#allocation3]  }
  0x19   :  { %s3285_s19 = scalar_lea.vmem %s46_s15, 256  ;;  %p3290_p11 = scmp.lt.s32.totalorder %s46_s15, %s46_s15 }
  0x1a   :  { %p3286_p10 = scmp.ne.s32.totalorder %s46_s15, %s3285_s19  ;;  %p3291_p12 = scmp.lt.s32.totalorder %s3285_s19, %s3285_s19 }
  0x1c   :  { %p3292_p13 = por %p3291_p12, %p3290_p11 }
  0x1e   :  { %p3293_p0 = pnand %p3292_p13, %p3286_p10 }
  0x20   :  { %3296 = shalt.err (!%p3293_p0)
}
  0x21   :  { %51 = dma.hbm_to_vmem [thread:$0]  %s3906_s3, 256, %s46_s15, [#allocation6], %s3324_s30, %s3324_s30, %s3325_s9  }
  0x22   :  { %3317 = dma.done.wait [#allocation3], 128  }
  0x23   :  { %3318 = vsyncadd [#allocation3], 4294967168 }
  0x24   :  { %3319 = dma.done.wait [#allocation6], 1536  }
  0x25   :  { %3320 = vsyncadd [#allocation6], 4294965760  ;;  %v3328_v0 = vmov 0.0   ;;  %vm3329_vm0 = vmmov 0   ;;  %v3391_v1 = vld [vmem:[#allocation7 + $0x8] sm:$0xff]  ;;  %v3393_v2 = vld [vmem:[#allocation7] sm:$0xff]  ;;  %v82_v39 = vlaneseq }
  0x26   :  { %2847 = vmatprep.subr.mxu0 %v3328_v0  ;;  %2851 = vmatprep.mubr.msk.f32.mxu0 %vm3329_vm0, %v3328_v0  ;;  %v3396_v3 = vld [vmem:[#allocation2] sm:$0xff]  ;;  %vm90_vm1 = vcmask 130048   ;;  %v3408_v4 = vld [vmem:[%s3907_s4 + $0x18] sm:$0xff]  ;;  %v3415_v5 = vld [vmem:[%s3907_s4 + $0x10] sm:$0xff]  ;;  %vm179_vm2 = vcmask 261120  }
  0x27   :  { %2854 = vmatprep.subr.mxu1 %v3328_v0  ;;  %2862 = vmatprep.mubr.msk.f32.mxu1 %vm3329_vm0, %v3328_v0  ;;  %v3422_v6 = vld [vmem:[%s3907_s4 + $0x8] sm:$0xff]  ;;  %v3429_v7 = vld [vmem:[%s3907_s4] sm:$0xff]  ;;  %v3446_v21 = vld [vmem:[%s3909_s6 + $0x18] sm:$0xff]  ;;  %v341_v42 = vmul.f32 1.0519096, %v3396_v3  ;;  %v3495_v43 = vand.u32 127, %v82_v39 }
  0x28   :  { %2848 = vmatpush3.msra.mxu0 %v3391_v1  ;;  %2855 = vmatpush3.msra.mxu1 %v3408_v4  ;;  %v2664_v8 = vld [vmem:[%s3905_s2 + $0x9] ss:$0 sm:$0xff]  ;;  %v3453_v22 = vld [vmem:[%s3909_s6 + $0x10] sm:$0xff]  ;;  %v3467_v24 = vld [vmem:[%s3909_s6] sm:$0xff]  ;;  %v348_v49 = vmul.f32 0.8002738, %v3396_v3 }
  0x29   :  { %2849 = vmatprep.subr.mxu0 %v3328_v0  ;;  %2856 = vmatprep.subr.mxu1 %v3328_v0  ;;  %v3460_v23 = vld [vmem:[%s3909_s6 + $0x8] sm:$0xff]  ;;  %v3474_v25 = vld [vmem:[%s3908_s5] ss:$0 sm:$0xff]  ;;  %vm84_vm3 = vcmp.lt.s32.totalorder %v3495_v43, 6  ;;  %v351_v48 = vld [vmem:[#allocation5 + $0x48] sm:$0xff] }
  0x2a   :  { %2850 = vmatpush3.msra.mxu0 %v3393_v2  ;;  %2857 = vmatpush3.msra.mxu1 %v3415_v5  ;;  %v3491_v38 = vld [vmem:[%s3910_s7] ss:$0 sm:$0xff]  ;;  %v352_v52 = vmul.f32 0.12715334, %v351_v48  ;;  %v2671_v55 = vld [vmem:[%s3905_s2 + $0x8] ss:$0 sm:$0xff] }
  0x2b   :  { %2852 = vmatmul.mubr.msk.f32.vlgmr.msra.gmra.mxu0 %vm90_vm1, %v3396_v3  ;;  %2865 = vmatprep.subr.mxu0 %v3328_v0 }
  0x2c   :  { %2873 = vmatprep.mubr.msk.f32.mxu0 %vm3329_vm0, %v3328_v0  ;;  %2858 = vmatprep.subr.mxu1 %v3328_v0 }
  0x2d   :  { %2859 = vmatpush3.msra.mxu1 %v3422_v6  ;;  %2866 = vmatpush3.msra.mxu0 %v3446_v21 }
  0x2e   :  { %2860 = vmatprep.subr.mxu1 %v3328_v0  ;;  %2867 = vmatprep.subr.mxu0 %v3328_v0 }
  0x2f   :  { %2861 = vmatpush3.msra.mxu1 %v3429_v7  ;;  %2868 = vmatpush3.msra.mxu0 %v3453_v22 }
  0x30   :  { %2876 = vmatprep.subr.mxu1 %v3328_v0  ;;  %2869 = vmatprep.subr.mxu0 %v3328_v0 }
  0x31   :  { %2870 = vmatpush3.msra.mxu0 %v3460_v23 }
  0x32   :  { %2871 = vmatprep.subr.mxu0 %v3328_v0 }
  0x33   :  { %2872 = vmatpush3.msra.mxu0 %v3467_v24 }
  0x34   :  { %2883 = vmatprep.subr.mxu0 %v3328_v0 }
  0xeb   :  { %v160_v9 = vpop.f32.mrf.mxu0 }
  0xec   :  { %v161_v10 = vadd.f32 %v2664_v8, %v160_v9 }
  0xed   :  { %v2853_v11 = vpop.f32.mrf.mxu0 }
  0xee   :  { %v164_v12 = vmul.f32 1.442695, %v161_v10 }
  0xf0   :  { %3145 = vpow2.f32 %v164_v12 }
  0xfd   :  { %v3146_v13 = vpop.eup %3145 }
  0xfe   :  { %v166_v14 = vadd.f32 1.0, %v3146_v13 }
 0x100   :  { %v167_v15 = vmul.f32 %v166_v14, %v166_v14 }
 0x102   :  { %v168_v16 = vadd.f32 1.0, %v167_v15 }
 0x104   :  { %3147 = vrcp.f32 %v168_v16 }
 0x111   :  { %v3148_v17 = vpop.eup %3147 }
 0x112   :  { %v170_v18 = vmul.f32 2.0, %v3148_v17 }
 0x114   :  { %v171_v19 = vsub.f32 1.0, %v170_v18 }
 0x116   :  { %v172_v20 = vmul.f32 %v171_v19, %v161_v10 }
 0x118   :  { %2863 = vmatmul.mubr.msk.f32.vlgmr.msra.gmra.mxu1 %vm179_vm2, %v172_v20 }
 0x119   :  { %2877 = vmatpush3.msra.mxu1 %v3391_v1  ;;  %2880 = vmatprep.mubr.msk.f32.mxu1 %vm3329_vm0, %v3328_v0 }
 0x11a   :  { %2878 = vmatprep.subr.mxu1 %v3328_v0 }
 0x11b   :  { %2879 = vmatpush3.msra.mxu1 %v3393_v2 }
 0x11c   :  { %2894 = vmatprep.subr.mxu1 %v3328_v0 }
 0x1d8   :  { %v249_v26 = vpop.f32.mrf.mxu1 }
 0x1d9   :  { %v250_v27 = vadd.f32 %v3474_v25, %v249_v26 }
 0x1da   :  { %v2864_v28 = vpop.f32.mrf.mxu1 }
 0x1db   :  { %v253_v29 = vmul.f32 1.442695, %v250_v27 }
 0x1dd   :  { %3149 = vpow2.f32 %v253_v29 }
 0x1ea   :  { %v3150_v30 = vpop.eup %3149 }
 0x1eb   :  { %v255_v31 = vadd.f32 1.0, %v3150_v30 }
 0x1ed   :  { %v256_v32 = vmul.f32 %v255_v31, %v255_v31 }
 0x1ef   :  { %v257_v33 = vadd.f32 1.0, %v256_v32 }
 0x1f1   :  { %3151 = vrcp.f32 %v257_v33 }
 0x1fe   :  { %v3152_v34 = vpop.eup %3151 }
 0x1ff   :  { %v259_v35 = vmul.f32 2.0, %v3152_v34 }
 0x201   :  { %v260_v36 = vsub.f32 1.0, %v259_v35  ;;  %v606_v35 = vld [vmem:[#allocation5 + $0x40] sm:$0xff] }
 0x203   :  { %v261_v37 = vmul.f32 %v260_v36, %v250_v27 }
 0x205   :  { %2874 = vmatmul.mubr.msk.f32.vlgmr.msra.gmra.mxu0 %vm179_vm2, %v261_v37 }
 0x206   :  { %2884 = vmatpush3.msra.mxu0 %v3408_v4  ;;  %2891 = vmatprep.mubr.msk.f32.mxu0 %vm3329_vm0, %v3328_v0 }
 0x207   :  { %2885 = vmatprep.subr.mxu0 %v3328_v0 }
 0x208   :  { %2886 = vmatpush3.msra.mxu0 %v3415_v5 }
 0x209   :  { %2887 = vmatprep.subr.mxu0 %v3328_v0 }
 0x20a   :  { %2888 = vmatpush3.msra.mxu0 %v3422_v6 }
 0x20b   :  { %2889 = vmatprep.subr.mxu0 %v3328_v0 }
 0x20c   :  { %2890 = vmatpush3.msra.mxu0 %v3429_v7 }
 0x20d   :  { %2905 = vmatprep.subr.mxu0 %v3328_v0 }
 0x2c5   :  { %v337_v40 = vpop.f32.mrf.mxu0 }
 0x2c6   :  { %v338_v41 = vadd.f32 %v3491_v38, %v337_v40  ;;  %v607_v40 = vmul.f32 0.118198514, %v606_v35 }
 0x2c7   :  { %v2875_v44 = vpop.f32.mrf.mxu0 }
 0x2c8   :  { %v342_v45 = vmul.f32 0.32636428, %v338_v41  ;;  %v2676_v44 = vld [vmem:[%s3905_s2 + $0x7] ss:$0 sm:$0xff] }
 0x2ca   :  { %v343_v46 = vsub.f32 %v341_v42, %v342_v45 }
 0x2cc   :  { %v2670_v47 = vclamps-f32 %v343_v46, 1.0 }
 0x2ce   :  { %v346_v50 = vsel %vm84_vm3, %v2670_v47, %v343_v46 }
 0x2cf   :  { %v347_v51 = vmul.f32 0.19952168, %v346_v50 }
 0x2d1   :  { %v349_v53 = vadd.f32 %v348_v49, %v347_v51 }
 0x2d3   :  { %v3501_v54 = vadd.f32 %v352_v52, %v349_v53 }
 0x2d5   :  { %2881 = vmatmul.mubr.msk.f32.vlgmr.msra.gmra.mxu1 %vm90_vm1, %v3501_v54  ;;  %v596_v31 = vmul.f32 1.0413373, %v3501_v54  ;;  %v603_v39 = vmul.f32 0.7783549, %v3501_v54 }
 0x2d6   :  { %2895 = vmatpush3.msra.mxu1 %v3446_v21  ;;  %2902 = vmatprep.mubr.msk.f32.mxu1 %vm3329_vm0, %v3328_v0 }
 0x2d7   :  { %2896 = vmatprep.subr.mxu1 %v3328_v0 }
 0x2d8   :  { %2897 = vmatpush3.msra.mxu1 %v3453_v22 }
 0x2d9   :  { %2898 = vmatprep.subr.mxu1 %v3328_v0 }
 0x2da   :  { %2899 = vmatpush3.msra.mxu1 %v3460_v23 }
 0x2db   :  { %2900 = vmatprep.subr.mxu1 %v3328_v0 }
 0x2dc   :  { %2901 = vmatpush3.msra.mxu1 %v3467_v24 }
 0x2dd   :  { %2912 = vmatprep.subr.mxu1 %v3328_v0 }
 0x395   :  { %v428_v56 = vpop.f32.mrf.mxu1 }
 0x396   :  { %v429_v57 = vadd.f32 %v2671_v55, %v428_v56 }
 0x397   :  { %v2882_v58 = vpop.f32.mrf.mxu1 }
 0x398   :  { %v432_v59 = vmul.f32 1.442695, %v429_v57 }
 0x39a   :  { %3153 = vpow2.f32 %v432_v59 }
 0x3a7   :  { %v3154_v60 = vpop.eup %3153 }
 0x3a8   :  { %v434_v61 = vadd.f32 1.0, %v3154_v60 }
 0x3aa   :  { %v435_v62 = vmul.f32 %v434_v61, %v434_v61 }
 0x3ac   :  { %v436_v63 = vadd.f32 1.0, %v435_v62 }
 0x3ae   :  { %3155 = vrcp.f32 %v436_v63 }
 0x3bb   :  { %v3156_v3 = vpop.eup %3155 }
 0x3bc   :  { %v438_v8 = vmul.f32 2.0, %v3156_v3 }
 0x3be   :  { %v439_v9 = vsub.f32 1.0, %v438_v8 }
 0x3c0   :  { %v440_v10 = vmul.f32 %v439_v9, %v429_v57 }
 0x3c2   :  { %2892 = vmatmul.mubr.msk.f32.vlgmr.msra.gmra.mxu0 %vm179_vm2, %v440_v10 }
 0x3c3   :  { %2906 = vmatpush3.msra.mxu0 %v3391_v1  ;;  %2909 = vmatprep.mubr.msk.f32.mxu0 %vm3329_vm0, %v3328_v0 }
 0x3c4   :  { %2907 = vmatprep.subr.mxu0 %v3328_v0 }
 0x3c5   :  { %2908 = vmatpush3.msra.mxu0 %v3393_v2 }
 0x3c6   :  { %2923 = vmatprep.subr.mxu0 %v3328_v0 }
 0x482   :  { %v510_v11 = vpop.f32.mrf.mxu0 }
 0x483   :  { %v511_v12 = vadd.f32 %v3474_v25, %v510_v11 }
 0x484   :  { %v2893_v13 = vpop.f32.mrf.mxu0 }
 0x485   :  { %v514_v14 = vmul.f32 1.442695, %v511_v12 }
 0x487   :  { %3157 = vpow2.f32 %v514_v14 }
 0x494   :  { %v3158_v15 = vpop.eup %3157 }
 0x495   :  { %v516_v16 = vadd.f32 1.0, %v3158_v15 }
 0x497   :  { %v517_v17 = vmul.f32 %v516_v16, %v516_v16 }
 0x499   :  { %v518_v18 = vadd.f32 1.0, %v517_v17 }
 0x49b   :  { %3159 = vrcp.f32 %v518_v18 }
 0x4a8   :  { %v3160_v19 = vpop.eup %3159 }
 0x4a9   :  { %v520_v20 = vmul.f32 2.0, %v3160_v19  ;;  %v861_v19 = vld [vmem:[#allocation5 + $0x38] sm:$0xff] }
 0x4ab   :  { %v521_v26 = vsub.f32 1.0, %v520_v20 }
 0x4ad   :  { %v522_v27 = vmul.f32 %v521_v26, %v511_v12 }
 0x4af   :  { %2903 = vmatmul.mubr.msk.f32.vlgmr.msra.gmra.mxu1 %vm179_vm2, %v522_v27 }
 0x4b0   :  { %2913 = vmatpush3.msra.mxu1 %v3408_v4  ;;  %2920 = vmatprep.mubr.msk.f32.mxu1 %vm3329_vm0, %v3328_v0 }
 0x4b1   :  { %2914 = vmatprep.subr.mxu1 %v3328_v0 }
 0x4b2   :  { %2915 = vmatpush3.msra.mxu1 %v3415_v5 }
 0x4b3   :  { %2916 = vmatprep.subr.mxu1 %v3328_v0 }
 0x4b4   :  { %2917 = vmatpush3.msra.mxu1 %v3422_v6 }
 0x4b5   :  { %2918 = vmatprep.subr.mxu1 %v3328_v0 }
 0x4b6   :  { %2919 = vmatpush3.msra.mxu1 %v3429_v7 }
 0x4b7   :  { %2934 = vmatprep.subr.mxu1 %v3328_v0 }
 0x56f   :  { %v592_v28 = vpop.f32.mrf.mxu1 }
 0x570   :  { %v593_v29 = vadd.f32 %v3491_v38, %v592_v28  ;;  %v862_v28 = vmul.f32 0.108585455, %v861_v19 }
 0x571   :  { %v2904_v30 = vpop.f32.mrf.mxu1 }
 0x572   :  { %v597_v32 = vmul.f32 0.29048818, %v593_v29 }
 0x574   :  { %v598_v33 = vsub.f32 %v596_v31, %v597_v32  ;;  %v2681_v31 = vld [vmem:[%s3905_s2 + $0x6] ss:$0 sm:$0xff] }
 0x576   :  { %v2675_v34 = vclamps-f32 %v598_v33, 1.0 }
 0x578   :  { %v601_v36 = vsel %vm84_vm3, %v2675_v34, %v598_v33 }
 0x579   :  { %v602_v37 = vmul.f32 0.22150367, %v601_v36 }
 0x57b   :  { %v604_v41 = vadd.f32 %v603_v39, %v602_v37 }
 0x57d   :  { %v3542_v42 = vadd.f32 %v607_v40, %v604_v41 }
 0x57f   :  { %2910 = vmatmul.mubr.msk.f32.vlgmr.msra.gmra.mxu0 %vm90_vm1, %v3542_v42  ;;  %v851_v15 = vmul.f32 1.0320337, %v3542_v42  ;;  %v858_v27 = vmul.f32 0.75098026, %v3542_v42 }
 0x580   :  { %2924 = vmatpush3.msra.mxu0 %v3446_v21  ;;  %2931 = vmatprep.mubr.msk.f32.mxu0 %vm3329_vm0, %v3328_v0 }
 0x581   :  { %2925 = vmatprep.subr.mxu0 %v3328_v0 }
 0x582   :  { %2926 = vmatpush3.msra.mxu0 %v3453_v22 }
 0x583   :  { %2927 = vmatprep.subr.mxu0 %v3328_v0 }
 0x584   :  { %2928 = vmatpush3.msra.mxu0 %v3460_v23 }
 0x585   :  { %2929 = vmatprep.subr.mxu0 %v3328_v0 }
 0x586   :  { %2930 = vmatpush3.msra.mxu0 %v3467_v24 }
 0x587   :  { %2941 = vmatprep.subr.mxu0 %v3328_v0 }
 0x63f   :  { %v683_v45 = vpop.f32.mrf.mxu0 }
 0x640   :  { %v684_v46 = vadd.f32 %v2676_v44, %v683_v45 }
 0x641   :  { %v2911_v47 = vpop.f32.mrf.mxu0 }
 0x642   :  { %v687_v48 = vmul.f32 1.442695, %v684_v46 }
 0x644   :  { %3161 = vpow2.f32 %v687_v48 }
 0x651   :  { %v3162_v49 = vpop.eup %3161 }
 0x652   :  { %v689_v50 = vadd.f32 1.0, %v3162_v49 }
 0x654   :  { %v690_v51 = vmul.f32 %v689_v50, %v689_v50 }
 0x656   :  { %v691_v52 = vadd.f32 1.0, %v690_v51 }
 0x658   :  { %3163 = vrcp.f32 %v691_v52 }
 0x665   :  { %v3164_v53 = vpop.eup %3163 }
 0x666   :  { %v693_v54 = vmul.f32 2.0, %v3164_v53 }
 0x668   :  { %v694_v55 = vsub.f32 1.0, %v693_v54 }
 0x66a   :  { %v695_v56 = vmul.f32 %v694_v55, %v684_v46 }
 0x66c   :  { %2921 = vmatmul.mubr.msk.f32.vlgmr.msra.gmra.mxu1 %vm179_vm2, %v695_v56 }
 0x66d   :  { %2935 = vmatpush3.msra.mxu1 %v3391_v1  ;;  %2938 = vmatprep.mubr.msk.f32.mxu1 %vm3329_vm0, %v3328_v0 }
 0x66e   :  { %2936 = vmatprep.subr.mxu1 %v3328_v0 }
 0x66f   :  { %2937 = vmatpush3.msra.mxu1 %v3393_v2 }
 0x670   :  { %2952 = vmatprep.subr.mxu1 %v3328_v0 }
 0x72c   :  { %v765_v57 = vpop.f32.mrf.mxu1 }
 0x72d   :  { %v766_v58 = vadd.f32 %v3474_v25, %v765_v57 }
 0x72e   :  { %v2922_v59 = vpop.f32.mrf.mxu1 }
 0x72f   :  { %v769_v60 = vmul.f32 1.442695, %v766_v58 }
 0x731   :  { %3165 = vpow2.f32 %v769_v60 }
 0x73e   :  { %v3166_v61 = vpop.eup %3165 }
 0x73f   :  { %v771_v62 = vadd.f32 1.0, %v3166_v61 }
 0x741   :  { %v772_v63 = vmul.f32 %v771_v62, %v771_v62 }
 0x743   :  { %v773_v3 = vadd.f32 1.0, %v772_v63 }
 0x745   :  { %3167 = vrcp.f32 %v773_v3 }
 0x752   :  { %v3168_v8 = vpop.eup %3167 }
 0x753   :  { %v775_v9 = vmul.f32 2.0, %v3168_v8  ;;  %v1116_v8 = vld [vmem:[#allocation5 + $0x30] sm:$0xff] }
 0x755   :  { %v776_v10 = vsub.f32 1.0, %v775_v9 }
 0x757   :  { %v777_v11 = vmul.f32 %v776_v10, %v766_v58 }
 0x759   :  { %2932 = vmatmul.mubr.msk.f32.vlgmr.msra.gmra.mxu0 %vm179_vm2, %v777_v11 }
 0x75a   :  { %2942 = vmatpush3.msra.mxu0 %v3408_v4  ;;  %2949 = vmatprep.mubr.msk.f32.mxu0 %vm3329_vm0, %v3328_v0 }
 0x75b   :  { %2943 = vmatprep.subr.mxu0 %v3328_v0 }
 0x75c   :  { %2944 = vmatpush3.msra.mxu0 %v3415_v5 }
 0x75d   :  { %2945 = vmatprep.subr.mxu0 %v3328_v0 }
 0x75e   :  { %2946 = vmatpush3.msra.mxu0 %v3422_v6 }
 0x75f   :  { %2947 = vmatprep.subr.mxu0 %v3328_v0 }
 0x760   :  { %2948 = vmatpush3.msra.mxu0 %v3429_v7 }
 0x761   :  { %2963 = vmatprep.subr.mxu0 %v3328_v0 }
 0x819   :  { %v847_v12 = vpop.f32.mrf.mxu0 }
 0x81a   :  { %v848_v13 = vadd.f32 %v3491_v38, %v847_v12  ;;  %v1117_v12 = vmul.f32 0.09814791, %v1116_v8 }
 0x81b   :  { %v2933_v14 = vpop.f32.mrf.mxu0 }
 0x81c   :  { %v852_v16 = vmul.f32 0.25513408, %v848_v13 }
 0x81e   :  { %v853_v17 = vsub.f32 %v851_v15, %v852_v16  ;;  %v2686_v15 = vld [vmem:[%s3905_s2 + $0x5] ss:$0 sm:$0xff] }
 0x820   :  { %v2680_v18 = vclamps-f32 %v853_v17, 1.0 }
 0x822   :  { %v856_v20 = vsel %vm84_vm3, %v2680_v18, %v853_v17 }
 0x823   :  { %v857_v26 = vmul.f32 0.24892682, %v856_v20 }
 0x825   :  { %v859_v29 = vadd.f32 %v858_v27, %v857_v26 }
 0x827   :  { %v3583_v30 = vadd.f32 %v862_v28, %v859_v29 }
 0x829   :  { %2939 = vmatmul.mubr.msk.f32.vlgmr.msra.gmra.mxu1 %vm90_vm1, %v3583_v30  ;;  %v1106_v61 = vmul.f32 1.0239637, %v3583_v30  ;;  %v1113_v11 = vmul.f32 0.7158414, %v3583_v30 }
 0x82a   :  { %2953 = vmatpush3.msra.mxu1 %v3446_v21  ;;  %2960 = vmatprep.mubr.msk.f32.mxu1 %vm3329_vm0, %v3328_v0 }
 0x82b   :  { %2954 = vmatprep.subr.mxu1 %v3328_v0 }
 0x82c   :  { %2955 = vmatpush3.msra.mxu1 %v3453_v22 }
 0x82d   :  { %2956 = vmatprep.subr.mxu1 %v3328_v0 }
 0x82e   :  { %2957 = vmatpush3.msra.mxu1 %v3460_v23 }
 0x82f   :  { %2958 = vmatprep.subr.mxu1 %v3328_v0 }
 0x830   :  { %2959 = vmatpush3.msra.mxu1 %v3467_v24 }
 0x831   :  { %2970 = vmatprep.subr.mxu1 %v3328_v0 }
 0x8e9   :  { %v938_v32 = vpop.f32.mrf.mxu1 }
 0x8ea   :  { %v939_v33 = vadd.f32 %v2681_v31, %v938_v32 }
 0x8eb   :  { %v2940_v34 = vpop.f32.mrf.mxu1 }
 0x8ec   :  { %v942_v35 = vmul.f32 1.442695, %v939_v33 }
 0x8ee   :  { %3169 = vpow2.f32 %v942_v35 }
 0x8fb   :  { %v3170_v36 = vpop.eup %3169 }
 0x8fc   :  { %v944_v37 = vadd.f32 1.0, %v3170_v36 }
 0x8fe   :  { %v945_v39 = vmul.f32 %v944_v37, %v944_v37 }
 0x900   :  { %v946_v40 = vadd.f32 1.0, %v945_v39 }
 0x902   :  { %3171 = vrcp.f32 %v946_v40 }
 0x90f   :  { %v3172_v41 = vpop.eup %3171 }
 0x910   :  { %v948_v42 = vmul.f32 2.0, %v3172_v41 }
 0x912   :  { %v949_v44 = vsub.f32 1.0, %v948_v42 }
 0x914   :  { %v950_v45 = vmul.f32 %v949_v44, %v939_v33 }
 0x916   :  { %2950 = vmatmul.mubr.msk.f32.vlgmr.msra.gmra.mxu0 %vm179_vm2, %v950_v45 }
 0x917   :  { %2964 = vmatpush3.msra.mxu0 %v3391_v1  ;;  %2967 = vmatprep.mubr.msk.f32.mxu0 %vm3329_vm0, %v3328_v0 }
 0x918   :  { %2965 = vmatprep.subr.mxu0 %v3328_v0 }
 0x919   :  { %2966 = vmatpush3.msra.mxu0 %v3393_v2 }
 0x91a   :  { %2981 = vmatprep.subr.mxu0 %v3328_v0 }
 0x9d6   :  { %v1020_v46 = vpop.f32.mrf.mxu0 }
 0x9d7   :  { %v1021_v47 = vadd.f32 %v3474_v25, %v1020_v46 }
 0x9d8   :  { %v2951_v48 = vpop.f32.mrf.mxu0 }
 0x9d9   :  { %v1024_v49 = vmul.f32 1.442695, %v1021_v47 }
 0x9db   :  { %3173 = vpow2.f32 %v1024_v49 }
 0x9e8   :  { %v3174_v50 = vpop.eup %3173 }
 0x9e9   :  { %v1026_v51 = vadd.f32 1.0, %v3174_v50 }
 0x9eb   :  { %v1027_v52 = vmul.f32 %v1026_v51, %v1026_v51 }
 0x9ed   :  { %v1028_v53 = vadd.f32 1.0, %v1027_v52 }
 0x9ef   :  { %3175 = vrcp.f32 %v1028_v53 }
 0x9fc   :  { %v3176_v54 = vpop.eup %3175 }
 0x9fd   :  { %v1030_v55 = vmul.f32 2.0, %v3176_v54  ;;  %v1371_v54 = vld [vmem:[#allocation5 + $0x28] sm:$0xff] }
 0x9ff   :  { %v1031_v56 = vsub.f32 1.0, %v1030_v55 }
 0xa01   :  { %v1032_v57 = vmul.f32 %v1031_v56, %v1021_v47 }
 0xa03   :  { %2961 = vmatmul.mubr.msk.f32.vlgmr.msra.gmra.mxu1 %vm179_vm2, %v1032_v57 }
 0xa04   :  { %2971 = vmatpush3.msra.mxu1 %v3408_v4  ;;  %2978 = vmatprep.mubr.msk.f32.mxu1 %vm3329_vm0, %v3328_v0 }
 0xa05   :  { %2972 = vmatprep.subr.mxu1 %v3328_v0 }
 0xa06   :  { %2973 = vmatpush3.msra.mxu1 %v3415_v5 }
 0xa07   :  { %2974 = vmatprep.subr.mxu1 %v3328_v0 }
 0xa08   :  { %2975 = vmatpush3.msra.mxu1 %v3422_v6 }
 0xa09   :  { %2976 = vmatprep.subr.mxu1 %v3328_v0 }
 0xa0a   :  { %2977 = vmatpush3.msra.mxu1 %v3429_v7 }
 0xa0b   :  { %2992 = vmatprep.subr.mxu1 %v3328_v0 }
 0xac3   :  { %v1102_v58 = vpop.f32.mrf.mxu1 }
 0xac4   :  { %v1103_v59 = vadd.f32 %v3491_v38, %v1102_v58  ;;  %v1372_v58 = vmul.f32 0.08663894, %v1371_v54 }
 0xac5   :  { %v2962_v60 = vpop.f32.mrf.mxu1 }
 0xac6   :  { %v1107_v62 = vmul.f32 0.22023082, %v1103_v59 }
 0xac8   :  { %v1108_v63 = vsub.f32 %v1106_v61, %v1107_v62  ;;  %v2691_v61 = vld [vmem:[%s3905_s2 + $0x4] ss:$0 sm:$0xff] }
 0xaca   :  { %v2685_v3 = vclamps-f32 %v1108_v63, 1.0 }
 0xacc   :  { %v1111_v9 = vsel %vm84_vm3, %v2685_v3, %v1108_v63 }
 0xacd   :  { %v1112_v10 = vmul.f32 0.28410155, %v1111_v9 }
 0xacf   :  { %v1114_v13 = vadd.f32 %v1113_v11, %v1112_v10 }
 0xad1   :  { %v3624_v14 = vadd.f32 %v1117_v12, %v1114_v13 }
 0xad3   :  { %2968 = vmatmul.mubr.msk.f32.vlgmr.msra.gmra.mxu0 %vm90_vm1, %v3624_v14  ;;  %v1361_v50 = vmul.f32 1.0170971, %v3624_v14  ;;  %v1368_v57 = vmul.f32 0.6691124, %v3624_v14 }
 0xad4   :  { %2982 = vmatpush3.msra.mxu0 %v3446_v21  ;;  %2989 = vmatprep.mubr.msk.f32.mxu0 %vm3329_vm0, %v3328_v0 }
 0xad5   :  { %2983 = vmatprep.subr.mxu0 %v3328_v0 }
 0xad6   :  { %2984 = vmatpush3.msra.mxu0 %v3453_v22 }
 0xad7   :  { %2985 = vmatprep.subr.mxu0 %v3328_v0 }
 0xad8   :  { %2986 = vmatpush3.msra.mxu0 %v3460_v23 }
 0xad9   :  { %2987 = vmatprep.subr.mxu0 %v3328_v0 }
 0xada   :  { %2988 = vmatpush3.msra.mxu0 %v3467_v24 }
 0xadb   :  { %2999 = vmatprep.subr.mxu0 %v3328_v0 }
 0xb93   :  { %v1193_v16 = vpop.f32.mrf.mxu0 }
 0xb94   :  { %v1194_v17 = vadd.f32 %v2686_v15, %v1193_v16 }
 0xb95   :  { %v2969_v18 = vpop.f32.mrf.mxu0 }
 0xb96   :  { %v1197_v19 = vmul.f32 1.442695, %v1194_v17 }
 0xb98   :  { %3177 = vpow2.f32 %v1197_v19 }
 0xba5   :  { %v3178_v20 = vpop.eup %3177 }
 0xba6   :  { %v1199_v26 = vadd.f32 1.0, %v3178_v20 }
 0xba8   :  { %v1200_v27 = vmul.f32 %v1199_v26, %v1199_v26 }
 0xbaa   :  { %v1201_v28 = vadd.f32 1.0, %v1200_v27 }
 0xbac   :  { %3179 = vrcp.f32 %v1201_v28 }
 0xbb9   :  { %v3180_v29 = vpop.eup %3179 }
 0xbba   :  { %v1203_v30 = vmul.f32 2.0, %v3180_v29 }
 0xbbc   :  { %v1204_v31 = vsub.f32 1.0, %v1203_v30 }
 0xbbe   :  { %v1205_v32 = vmul.f32 %v1204_v31, %v1194_v17 }
 0xbc0   :  { %2979 = vmatmul.mubr.msk.f32.vlgmr.msra.gmra.mxu1 %vm179_vm2, %v1205_v32 }
 0xbc1   :  { %2993 = vmatpush3.msra.mxu1 %v3391_v1  ;;  %2996 = vmatprep.mubr.msk.f32.mxu1 %vm3329_vm0, %v3328_v0 }
 0xbc2   :  { %2994 = vmatprep.subr.mxu1 %v3328_v0 }
 0xbc3   :  { %2995 = vmatpush3.msra.mxu1 %v3393_v2 }
 0xbc4   :  { %3010 = vmatprep.subr.mxu1 %v3328_v0 }
 0xc80   :  { %v1275_v33 = vpop.f32.mrf.mxu1 }
 0xc81   :  { %v1276_v34 = vadd.f32 %v3474_v25, %v1275_v33 }
 0xc82   :  { %v2980_v35 = vpop.f32.mrf.mxu1 }
 0xc83   :  { %v1279_v36 = vmul.f32 1.442695, %v1276_v34 }
 0xc85   :  { %3181 = vpow2.f32 %v1279_v36 }
 0xc92   :  { %v3182_v37 = vpop.eup %3181 }
 0xc93   :  { %v1281_v39 = vadd.f32 1.0, %v3182_v37 }
 0xc95   :  { %v1282_v40 = vmul.f32 %v1281_v39, %v1281_v39 }
 0xc97   :  { %v1283_v41 = vadd.f32 1.0, %v1282_v40 }
 0xc99   :  { %3183 = vrcp.f32 %v1283_v41 }
 0xca6   :  { %v3184_v42 = vpop.eup %3183 }
 0xca7   :  { %v1285_v44 = vmul.f32 2.0, %v3184_v42  ;;  %v1626_v42 = vld [vmem:[#allocation5 + $0x20] sm:$0xff] }
 0xca9   :  { %v1286_v45 = vsub.f32 1.0, %v1285_v44 }
 0xcab   :  { %v1287_v46 = vmul.f32 %v1286_v45, %v1276_v34 }
 0xcad   :  { %2990 = vmatmul.mubr.msk.f32.vlgmr.msra.gmra.mxu0 %vm179_vm2, %v1287_v46 }
 0xcae   :  { %3000 = vmatpush3.msra.mxu0 %v3408_v4  ;;  %3007 = vmatprep.mubr.msk.f32.mxu0 %vm3329_vm0, %v3328_v0 }
 0xcaf   :  { %3001 = vmatprep.subr.mxu0 %v3328_v0 }
 0xcb0   :  { %3002 = vmatpush3.msra.mxu0 %v3415_v5 }
 0xcb1   :  { %3003 = vmatprep.subr.mxu0 %v3328_v0 }
 0xcb2   :  { %3004 = vmatpush3.msra.mxu0 %v3422_v6 }
 0xcb3   :  { %3005 = vmatprep.subr.mxu0 %v3328_v0 }
 0xcb4   :  { %3006 = vmatpush3.msra.mxu0 %v3429_v7 }
 0xcb5   :  { %3021 = vmatprep.subr.mxu0 %v3328_v0 }
 0xd6d   :  { %v1357_v47 = vpop.f32.mrf.mxu0 }
 0xd6e   :  { %v1358_v48 = vadd.f32 %v3491_v38, %v1357_v47  ;;  %v1627_v47 = vmul.f32 0.073664464, %v1626_v42  ;;  %v3771_v42 = vld [vmem:[#allocation7] sm:$0xff] }
 0xd6f   :  { %v2991_v49 = vpop.f32.mrf.mxu0 }
 0xd70   :  { %v1362_v51 = vmul.f32 0.1857058, %v1358_v48 }
 0xd72   :  { %v1363_v52 = vsub.f32 %v1361_v50, %v1362_v51  ;;  %v2696_v50 = vld [vmem:[%s3905_s2 + $0x3] ss:$0 sm:$0xff] }
 0xd74   :  { %v2690_v53 = vclamps-f32 %v1363_v52, 1.0 }
 0xd76   :  { %v1366_v55 = vsel %vm84_vm3, %v2690_v53, %v1363_v52 }
 0xd77   :  { %v1367_v56 = vmul.f32 0.3308558, %v1366_v55 }
 0xd79   :  { %v1369_v59 = vadd.f32 %v1368_v57, %v1367_v56 }
 0xd7b   :  { %v3665_v60 = vadd.f32 %v1372_v58, %v1369_v59 }
 0xd7d   :  { %2997 = vmatmul.mubr.msk.f32.vlgmr.msra.gmra.mxu1 %vm90_vm1, %v3665_v60  ;;  %v1616_v37 = vmul.f32 1.0114081, %v3665_v60  ;;  %v1623_v46 = vmul.f32 0.60396487, %v3665_v60 }
 0xd7e   :  { %3011 = vmatpush3.msra.mxu1 %v3446_v21  ;;  %3018 = vmatprep.mubr.msk.f32.mxu1 %vm3329_vm0, %v3328_v0 }
 0xd7f   :  { %3012 = vmatprep.subr.mxu1 %v3328_v0 }
 0xd80   :  { %3013 = vmatpush3.msra.mxu1 %v3453_v22 }
 0xd81   :  { %3014 = vmatprep.subr.mxu1 %v3328_v0 }
 0xd82   :  { %3015 = vmatpush3.msra.mxu1 %v3460_v23 }
 0xd83   :  { %3016 = vmatprep.subr.mxu1 %v3328_v0 }
 0xd84   :  { %3017 = vmatpush3.msra.mxu1 %v3467_v24 }
 0xd85   :  { %3028 = vmatprep.subr.mxu1 %v3328_v0 }
 0xe3d   :  { %v1448_v62 = vpop.f32.mrf.mxu1 }
 0xe3e   :  { %v1449_v63 = vadd.f32 %v2691_v61, %v1448_v62 }
 0xe3f   :  { %v2998_v3 = vpop.f32.mrf.mxu1 }
 0xe40   :  { %v1452_v8 = vmul.f32 1.442695, %v1449_v63 }
 0xe42   :  { %3185 = vpow2.f32 %v1452_v8 }
 0xe4f   :  { %v3186_v9 = vpop.eup %3185 }
 0xe50   :  { %v1454_v10 = vadd.f32 1.0, %v3186_v9 }
 0xe52   :  { %v1455_v11 = vmul.f32 %v1454_v10, %v1454_v10 }
 0xe54   :  { %v1456_v12 = vadd.f32 1.0, %v1455_v11 }
 0xe56   :  { %3187 = vrcp.f32 %v1456_v12 }
 0xe63   :  { %v3188_v13 = vpop.eup %3187 }
 0xe64   :  { %v1458_v14 = vmul.f32 2.0, %v3188_v13 }
 0xe66   :  { %v1459_v15 = vsub.f32 1.0, %v1458_v14 }
 0xe68   :  { %v1460_v16 = vmul.f32 %v1459_v15, %v1449_v63 }
 0xe6a   :  { %3008 = vmatmul.mubr.msk.f32.vlgmr.msra.gmra.mxu0 %vm179_vm2, %v1460_v16 }
 0xe6b   :  { %3022 = vmatpush3.msra.mxu0 %v3391_v1  ;;  %3025 = vmatprep.mubr.msk.f32.mxu0 %vm3329_vm0, %v3328_v0 }
 0xe6c   :  { %3023 = vmatprep.subr.mxu0 %v3328_v0 }
 0xe6d   :  { %3024 = vmatpush3.msra.mxu0 %v3393_v2 }
 0xe6e   :  { %3039 = vmatprep.subr.mxu0 %v3328_v0 }
 0xf2a   :  { %v1530_v17 = vpop.f32.mrf.mxu0 }
 0xf2b   :  { %v1531_v18 = vadd.f32 %v3474_v25, %v1530_v17 }
 0xf2c   :  { %v3009_v19 = vpop.f32.mrf.mxu0 }
 0xf2d   :  { %v1534_v20 = vmul.f32 1.442695, %v1531_v18 }
 0xf2f   :  { %3189 = vpow2.f32 %v1534_v20 }
 0xf3c   :  { %v3190_v26 = vpop.eup %3189 }
 0xf3d   :  { %v1536_v27 = vadd.f32 1.0, %v3190_v26 }
 0xf3f   :  { %v1537_v28 = vmul.f32 %v1536_v27, %v1536_v27 }
 0xf41   :  { %v1538_v29 = vadd.f32 1.0, %v1537_v28 }
 0xf43   :  { %3191 = vrcp.f32 %v1538_v29 }
 0xf50   :  { %v3192_v30 = vpop.eup %3191 }
 0xf51   :  { %v1540_v31 = vmul.f32 2.0, %v3192_v30 }
 0xf53   :  { %v1541_v32 = vsub.f32 1.0, %v1540_v31 }
 0xf55   :  { %v1542_v33 = vmul.f32 %v1541_v32, %v1531_v18 }
 0xf57   :  { %3019 = vmatmul.mubr.msk.f32.vlgmr.msra.gmra.mxu1 %vm179_vm2, %v1542_v33 }
 0xf58   :  { %3029 = vmatpush3.msra.mxu1 %v3408_v4  ;;  %3036 = vmatprep.mubr.msk.f32.mxu1 %vm3329_vm0, %v3328_v0 }
 0xf59   :  { %3030 = vmatprep.subr.mxu1 %v3328_v0 }
 0xf5a   :  { %3031 = vmatpush3.msra.mxu1 %v3415_v5 }
 0xf5b   :  { %3032 = vmatprep.subr.mxu1 %v3328_v0 }
 0xf5c   :  { %3033 = vmatpush3.msra.mxu1 %v3422_v6 }
 0xf5d   :  { %3034 = vmatprep.subr.mxu1 %v3328_v0 }
 0xf5e   :  { %3035 = vmatpush3.msra.mxu1 %v3429_v7 }
 0xf5f   :  { %3050 = vmatprep.subr.mxu1 %v3328_v0 }
0x1017   :  { %v1612_v34 = vpop.f32.mrf.mxu1 }
0x1018   :  { %v1613_v35 = vadd.f32 %v3491_v38, %v1612_v34 }
0x1019   :  { %v3020_v36 = vpop.f32.mrf.mxu1 }
0x101a   :  { %v1617_v39 = vmul.f32 0.15148059, %v1613_v35 }
0x101c   :  { %v1618_v40 = vsub.f32 %v1616_v37, %v1617_v39 }
0x101e   :  { %v2695_v41 = vclamps-f32 %v1618_v40, 1.0 }
0x1020   :  { %v1621_v44 = vsel %vm84_vm3, %v2695_v41, %v1618_v40  ;;  %v3765_v41 = vld [vmem:[#allocation7 + $0x8] sm:$0xff] }
0x1021   :  { %v1622_v45 = vmul.f32 0.39601976, %v1621_v44 }
0x1023   :  { %v1624_v48 = vadd.f32 %v1623_v46, %v1622_v45 }
0x1025   :  { %v3706_v49 = vadd.f32 %v1627_v47, %v1624_v48 }
0x1027   :  { %3026 = vmatmul.mubr.msk.f32.vlgmr.msra.gmra.mxu0 %vm90_vm1, %v3706_v49  ;;  %v1871_v18 = vmul.f32 1.0068747, %v3706_v49  ;;  %v1878_v28 = vmul.f32 0.5069362, %v3706_v49 }
0x1028   :  { %3040 = vmatpush3.msra.mxu0 %v3446_v21  ;;  %3047 = vmatprep.mubr.msk.f32.mxu0 %vm3329_vm0, %v3328_v0 }
0x1029   :  { %3041 = vmatprep.subr.mxu0 %v3328_v0 }
0x102a   :  { %3042 = vmatpush3.msra.mxu0 %v3453_v22 }
0x102b   :  { %3043 = vmatprep.subr.mxu0 %v3328_v0 }
0x102c   :  { %3044 = vmatpush3.msra.mxu0 %v3460_v23 }
0x102d   :  { %3045 = vmatprep.subr.mxu0 %v3328_v0 }
0x102e   :  { %3046 = vmatpush3.msra.mxu0 %v3467_v24 }
0x102f   :  { %3057 = vmatprep.subr.mxu0 %v3328_v0 }
0x10e7   :  { %v1703_v51 = vpop.f32.mrf.mxu0 }
0x10e8   :  { %v1704_v52 = vadd.f32 %v2696_v50, %v1703_v51 }
0x10e9   :  { %v3027_v53 = vpop.f32.mrf.mxu0 }
0x10ea   :  { %v1707_v54 = vmul.f32 1.442695, %v1704_v52 }
0x10ec   :  { %3193 = vpow2.f32 %v1707_v54 }
0x10f9   :  { %v3194_v55 = vpop.eup %3193 }
0x10fa   :  { %v1709_v56 = vadd.f32 1.0, %v3194_v55 }
0x10fc   :  { %v1710_v57 = vmul.f32 %v1709_v56, %v1709_v56  ;;  %v3780_v56 = vld [vmem:[%s3907_s4 + $0x18] sm:$0xff] }
0x10fe   :  { %v1711_v58 = vadd.f32 1.0, %v1710_v57  ;;  %v3796_v57 = vld [vmem:[%s3907_s4 + $0x8] sm:$0xff] }
0x1100   :  { %3195 = vrcp.f32 %v1711_v58  ;;  %v3803_v58 = vld [vmem:[%s3907_s4] sm:$0xff] }
0x110d   :  { %v3196_v59 = vpop.eup %3195 }
0x110e   :  { %v1713_v60 = vmul.f32 2.0, %v3196_v59 }
0x1110   :  { %v1714_v61 = vsub.f32 1.0, %v1713_v60 }
0x1112   :  { %v1715_v62 = vmul.f32 %v1714_v61, %v1704_v52 }
0x1114   :  { %3037 = vmatmul.mubr.msk.f32.vlgmr.msra.gmra.mxu1 %vm179_vm2, %v1715_v62 }
0x1115   :  { %3051 = vmatpush3.msra.mxu1 %v3391_v1  ;;  %3054 = vmatprep.mubr.msk.f32.mxu1 %vm3329_vm0, %v3328_v0 }
0x1116   :  { %3052 = vmatprep.subr.mxu1 %v3328_v0 }
0x1117   :  { %3053 = vmatpush3.msra.mxu1 %v3393_v2 }
0x1118   :  { %3068 = vmatprep.subr.mxu1 %v3328_v0 }
0x11d4   :  { %v1785_v63 = vpop.f32.mrf.mxu1 }
0x11d5   :  { %v1786_v3 = vadd.f32 %v3474_v25, %v1785_v63 }
0x11d6   :  { %v3038_v8 = vpop.f32.mrf.mxu1 }
0x11d7   :  { %v1789_v9 = vmul.f32 1.442695, %v1786_v3 }
0x11d9   :  { %3197 = vpow2.f32 %v1789_v9  ;;  %v2136_v9 = vld [vmem:[#allocation5 + $0x10] sm:$0xff] }
0x11e6   :  { %v3198_v10 = vpop.eup %3197 }
0x11e7   :  { %v1791_v11 = vadd.f32 1.0, %v3198_v10 }
0x11e9   :  { %v1792_v12 = vmul.f32 %v1791_v11, %v1791_v11 }
0x11eb   :  { %v1793_v13 = vadd.f32 1.0, %v1792_v12 }
0x11ed   :  { %3199 = vrcp.f32 %v1793_v13  ;;  %v2137_v13 = vmul.f32 0.039686397, %v2136_v9 }
0x11fa   :  { %v3200_v1 = vpop.eup %3199 }
0x11fb   :  { %v1795_v14 = vmul.f32 2.0, %v3200_v1 }
0x11fd   :  { %v1796_v15 = vsub.f32 1.0, %v1795_v14 }
0x11ff   :  { %v1797_v16 = vmul.f32 %v1796_v15, %v1786_v3  ;;  %v3828_v15 = vld [vmem:[%s3909_s6 + $0x10] sm:$0xff] }
0x1201   :  { %3048 = vmatmul.mubr.msk.f32.vlgmr.msra.gmra.mxu0 %vm179_vm2, %v1797_v16  ;;  %v3835_v16 = vld [vmem:[%s3909_s6 + $0x8] sm:$0xff] }
0x1202   :  { %3058 = vmatpush3.msra.mxu0 %v3408_v4  ;;  %3065 = vmatprep.mubr.msk.f32.mxu0 %vm3329_vm0, %v3328_v0 }
0x1203   :  { %3059 = vmatprep.subr.mxu0 %v3328_v0 }
0x1204   :  { %3060 = vmatpush3.msra.mxu0 %v3415_v5  ;;  %v1881_v5 = vld [vmem:[#allocation5 + $0x18] sm:$0xff] }
0x1205   :  { %3061 = vmatprep.subr.mxu0 %v3328_v0  ;;  %v1882_v29 = vmul.f32 0.058522817, %v1881_v5 }
0x1206   :  { %3062 = vmatpush3.msra.mxu0 %v3422_v6 }
0x1207   :  { %3063 = vmatprep.subr.mxu0 %v3328_v0 }
0x1208   :  { %3064 = vmatpush3.msra.mxu0 %v3429_v7 }
0x1209   :  { %3079 = vmatprep.subr.mxu0 %v3328_v0 }
0x12c1   :  { %v1867_v2 = vpop.f32.mrf.mxu0 }
0x12c2   :  { %v1868_v4 = vadd.f32 %v3491_v38, %v1867_v2  ;;  %v3842_v2 = vld [vmem:[%s3909_s6] sm:$0xff] }
0x12c3   :  { %v3049_v17 = vpop.f32.mrf.mxu0 }
0x12c4   :  { %v1872_v19 = vmul.f32 0.117459275, %v1868_v4  ;;  %v2706_v4 = vld [vmem:[%s3905_s2 + $0x1] ss:$0 sm:$0xff] }
0x12c6   :  { %v1873_v20 = vsub.f32 %v1871_v18, %v1872_v19 }
0x12c8   :  { %v2700_v26 = vclamps-f32 %v1873_v20, 1.0 }
0x12ca   :  { %v1876_v27 = vsel %vm84_vm3, %v2700_v26, %v1873_v20 }
0x12cb   :  { %v1877_v6 = vmul.f32 0.49305797, %v1876_v27 }
0x12cd   :  { %v1879_v7 = vadd.f32 %v1878_v28, %v1877_v6 }
0x12cf   :  { %v3747_v30 = vadd.f32 %v1882_v29, %v1879_v7 }
0x12d1   :  { %3055 = vmatmul.mubr.msk.f32.vlgmr.msra.gmra.mxu1 %vm90_vm1, %v3747_v30  ;;  %v2126_v62 = vmul.f32 1.0034791, %v3747_v30  ;;  %v2133_v12 = vmul.f32 0.34749395, %v3747_v30 }
0x12d2   :  { %3069 = vmatpush3.msra.mxu1 %v3446_v21  ;;  %3076 = vmatprep.mubr.msk.f32.mxu1 %vm3329_vm0, %v3328_v0  ;;  %v2701_v21 = vld [vmem:[%s3905_s2 + $0x2] ss:$0 sm:$0xff] }
0x12d3   :  { %3070 = vmatprep.subr.mxu1 %v3328_v0 }
0x12d4   :  { %3071 = vmatpush3.msra.mxu1 %v3453_v22 }
0x12d5   :  { %3072 = vmatprep.subr.mxu1 %v3328_v0 }
0x12d6   :  { %3073 = vmatpush3.msra.mxu1 %v3460_v23 }
0x12d7   :  { %3074 = vmatprep.subr.mxu1 %v3328_v0 }
0x12d8   :  { %3075 = vmatpush3.msra.mxu1 %v3467_v24 }
0x12d9   :  { %3086 = vmatprep.subr.mxu1 %v3328_v0 }
0x1391   :  { %v1958_v31 = vpop.f32.mrf.mxu1 }
0x1392   :  { %v1959_v32 = vadd.f32 %v2701_v21, %v1958_v31  ;;  %v3859_v31 = vld [vmem:[%s3908_s5] ss:$0 sm:$0xff] }
0x1393   :  { %v3056_v33 = vpop.f32.mrf.mxu1 }
0x1394   :  { %v1962_v34 = vmul.f32 1.442695, %v1959_v32 }
0x1396   :  { %3201 = vpow2.f32 %v1962_v34 }
0x13a3   :  { %v3202_v22 = vpop.eup %3201 }
0x13a4   :  { %v1964_v35 = vadd.f32 1.0, %v3202_v22 }
0x13a6   :  { %v1965_v36 = vmul.f32 %v1964_v35, %v1964_v35 }
0x13a8   :  { %v1966_v37 = vadd.f32 1.0, %v1965_v36 }
0x13aa   :  { %3203 = vrcp.f32 %v1966_v37 }
0x13b7   :  { %v3204_v23 = vpop.eup %3203 }
0x13b8   :  { %v1968_v39 = vmul.f32 2.0, %v3204_v23 }
0x13ba   :  { %v1969_v40 = vsub.f32 1.0, %v1968_v39 }
0x13bc   :  { %v1970_v24 = vmul.f32 %v1969_v40, %v1959_v32 }
0x13be   :  { %3066 = vmatmul.mubr.msk.f32.vlgmr.msra.gmra.mxu0 %vm179_vm2, %v1970_v24 }
0x13bf   :  { %3080 = vmatpush3.msra.mxu0 %v3765_v41  ;;  %3083 = vmatprep.mubr.msk.f32.mxu0 %vm3329_vm0, %v3328_v0 }
0x13c0   :  { %3081 = vmatprep.subr.mxu0 %v3328_v0 }
0x13c1   :  { %3082 = vmatpush3.msra.mxu0 %v3771_v42 }
0x13c2   :  { %3097 = vmatprep.subr.mxu0 %v3328_v0 }
0x147e   :  { %v2040_v44 = vpop.f32.mrf.mxu0 }
0x147f   :  { %v2041_v45 = vadd.f32 %v3474_v25, %v2040_v44  ;;  %v3789_v25 = vld [vmem:[%s3907_s4 + $0x10] sm:$0xff] }
0x1480   :  { %v3067_v46 = vpop.f32.mrf.mxu0 }
0x1481   :  { %v2044_v47 = vmul.f32 1.442695, %v2041_v45 }
0x1483   :  { %3205 = vpow2.f32 %v2044_v47 }
0x1490   :  { %v3206_v48 = vpop.eup %3205 }
0x1491   :  { %v2046_v49 = vadd.f32 1.0, %v3206_v48 }
0x1493   :  { %v2047_v50 = vmul.f32 %v2046_v49, %v2046_v49 }
0x1495   :  { %v2048_v51 = vadd.f32 1.0, %v2047_v50  ;;  %v2391_v50 = vld [vmem:[#allocation5 + $0x8] sm:$0xff] }
0x1497   :  { %3207 = vrcp.f32 %v2048_v51 }
0x14a4   :  { %v3208_v52 = vpop.eup %3207 }
0x14a5   :  { %v2050_v53 = vmul.f32 2.0, %v3208_v52 }
0x14a7   :  { %v2051_v54 = vsub.f32 1.0, %v2050_v53 }
0x14a9   :  { %v2052_v55 = vmul.f32 %v2051_v54, %v2041_v45  ;;  %v2392_v54 = vmul.f32 0.0097909, %v2391_v50 }
0x14ab   :  { %3077 = vmatmul.mubr.msk.f32.vlgmr.msra.gmra.mxu1 %vm179_vm2, %v2052_v55 }
0x14ac   :  { %3087 = vmatpush3.msra.mxu1 %v3780_v56  ;;  %3094 = vmatprep.mubr.msk.f32.mxu1 %vm3329_vm0, %v3328_v0 }
0x14ad   :  { %3088 = vmatprep.subr.mxu1 %v3328_v0 }
0x14ae   :  { %3089 = vmatpush3.msra.mxu1 %v3789_v25 }
0x14af   :  { %3090 = vmatprep.subr.mxu1 %v3328_v0 }
0x14b0   :  { %3091 = vmatpush3.msra.mxu1 %v3796_v57 }
0x14b1   :  { %3092 = vmatprep.subr.mxu1 %v3328_v0 }
0x14b2   :  { %3093 = vmatpush3.msra.mxu1 %v3803_v58 }
0x14b3   :  { %3108 = vmatprep.subr.mxu1 %v3328_v0 }
0x156b   :  { %v2122_v59 = vpop.f32.mrf.mxu1 }
0x156c   :  { %v2123_v60 = vadd.f32 %v3491_v38, %v2122_v59  ;;  %v3819_v38 = vld [vmem:[%s3909_s6 + $0x18] sm:$0xff] }
0x156d   :  { %v3078_v61 = vpop.f32.mrf.mxu1 }
0x156e   :  { %v2127_v63 = vmul.f32 0.083489224, %v2123_v60 }
0x1570   :  { %v2128_v3 = vsub.f32 %v2126_v62, %v2127_v63 }
0x1572   :  { %v2705_v8 = vclamps-f32 %v2128_v3, 1.0 }
0x1574   :  { %v2131_v10 = vsel %vm84_vm3, %v2705_v8, %v2128_v3 }
0x1575   :  { %v2132_v11 = vmul.f32 0.6525047, %v2131_v10 }
0x1577   :  { %v2134_v1 = vadd.f32 %v2133_v12, %v2132_v11 }
0x1579   :  { %v3812_v14 = vadd.f32 %v2137_v13, %v2134_v1 }
0x157b   :  { %3084 = vmatmul.mubr.msk.f32.vlgmr.msra.gmra.mxu0 %vm90_vm1, %v3812_v14  ;;  %v2381_v46 = vmul.f32 1.0012076, %v3812_v14  ;;  %v2388_v53 = vmul.f32 0.04143067, %v3812_v14 }
0x157c   :  { %3098 = vmatpush3.msra.mxu0 %v3819_v38  ;;  %3105 = vmatprep.mubr.msk.f32.mxu0 %vm3329_vm0, %v3328_v0 }
0x157d   :  { %3099 = vmatprep.subr.mxu0 %v3328_v0 }
0x157e   :  { %3100 = vmatpush3.msra.mxu0 %v3828_v15 }
0x157f   :  { %3101 = vmatprep.subr.mxu0 %v3328_v0 }
0x1580   :  { %3102 = vmatpush3.msra.mxu0 %v3835_v16 }
0x1581   :  { %3103 = vmatprep.subr.mxu0 %v3328_v0 }
0x1582   :  { %3104 = vmatpush3.msra.mxu0 %v3842_v2 }
0x1583   :  { %3115 = vmatprep.subr.mxu0 %v3328_v0 }
0x163b   :  { %v2213_v17 = vpop.f32.mrf.mxu0 }
0x163c   :  { %v2214_v18 = vadd.f32 %v2706_v4, %v2213_v17 }
0x163d   :  { %v3085_v19 = vpop.f32.mrf.mxu0 }
0x163e   :  { %v2217_v20 = vmul.f32 1.442695, %v2214_v18 }
0x1640   :  { %3209 = vpow2.f32 %v2217_v20 }
0x164d   :  { %v3210_v26 = vpop.eup %3209 }
0x164e   :  { %v2219_v5 = vadd.f32 1.0, %v3210_v26 }
0x1650   :  { %v2220_v27 = vmul.f32 %v2219_v5, %v2219_v5 }
0x1652   :  { %v2221_v6 = vadd.f32 1.0, %v2220_v27 }
0x1654   :  { %3211 = vrcp.f32 %v2221_v6 }
0x1661   :  { %v3212_v28 = vpop.eup %3211 }
0x1662   :  { %v2223_v29 = vmul.f32 2.0, %v3212_v28 }
0x1664   :  { %v2224_v7 = vsub.f32 1.0, %v2223_v29 }
0x1666   :  { %v2225_v30 = vmul.f32 %v2224_v7, %v2214_v18 }
0x1668   :  { %3095 = vmatmul.mubr.msk.f32.vlgmr.msra.gmra.mxu1 %vm179_vm2, %v2225_v30 }
0x1669   :  { %3109 = vmatpush3.msra.mxu1 %v3765_v41  ;;  %3112 = vmatprep.mubr.msk.f32.mxu1 %vm3329_vm0, %v3328_v0 }
0x166a   :  { %3110 = vmatprep.subr.mxu1 %v3328_v0 }
0x166b   :  { %3111 = vmatpush3.msra.mxu1 %v3771_v42  ;;  %v3236_v42 = vld [vmem:[%s3910_s7] ss:$0 sm:$0xff] }
0x166c   :  { %3126 = vmatprep.subr.mxu1 %v3328_v0 }
0x1728   :  { %v2295_v21 = vpop.f32.mrf.mxu1 }
0x1729   :  { %v2296_v32 = vadd.f32 %v3859_v31, %v2295_v21 }
0x172a   :  { %v3096_v33 = vpop.f32.mrf.mxu1 }
0x172b   :  { %v2299_v34 = vmul.f32 1.442695, %v2296_v32 }
0x172d   :  { %3213 = vpow2.f32 %v2299_v34 }
0x173a   :  { %v3214_v22 = vpop.eup %3213 }
0x173b   :  { %v2301_v35 = vadd.f32 1.0, %v3214_v22 }
0x173d   :  { %v2302_v36 = vmul.f32 %v2301_v35, %v2301_v35 }
0x173f   :  { %v2303_v37 = vadd.f32 1.0, %v2302_v36 }
0x1741   :  { %3215 = vrcp.f32 %v2303_v37 }
0x174e   :  { %v3216_v23 = vpop.eup %3215 }
0x174f   :  { %v2305_v39 = vmul.f32 2.0, %v3216_v23 }
0x1751   :  { %v2306_v40 = vsub.f32 1.0, %v2305_v39 }
0x1753   :  { %v2307_v24 = vmul.f32 %v2306_v40, %v2296_v32 }
0x1755   :  { %3106 = vmatmul.mubr.msk.f32.vlgmr.msra.gmra.mxu0 %vm179_vm2, %v2307_v24 }
0x1756   :  { %3116 = vmatpush3.msra.mxu0 %v3780_v56  ;;  %3123 = vmatprep.mubr.msk.f32.mxu0 %vm3329_vm0, %v3328_v0 }
0x1757   :  { %3117 = vmatprep.subr.mxu0 %v3328_v0 }
0x1758   :  { %3118 = vmatpush3.msra.mxu0 %v3789_v25  ;;  %v2711_v25 = vld [vmem:[%s3905_s2] ss:$0 sm:$0xff]  ;;  %s3330_s2 = smov [#allocation8]  }
0x1759   :  { %3119 = vmatprep.subr.mxu0 %v3328_v0  ;;  %s2654_s25 = sshll.u32 %s3330_s2, 4  ;;  %s2655_s25 = int_to_ptr.vmem [resolvable:$true] %s2654_s25 }
0x175a   :  { %3120 = vmatpush3.msra.mxu0 %v3796_v57  ;;  %s3297_s26 = scalar_lea.vmem %s2655_s25, 128  ;;  %p3302_p2 = scmp.lt.s32.totalorder %s2655_s25, %s2655_s25 }
0x175b   :  { %3121 = vmatprep.subr.mxu0 %v3328_v0  ;;  %p3298_p1 = scmp.ne.s32.totalorder %s2655_s25, %s3297_s26  ;;  %p3303_p3 = scmp.lt.s32.totalorder %s3297_s26, %s3297_s26 }
0x175c   :  { %3122 = vmatpush3.msra.mxu0 %v3803_v58 }
0x175d   :  { %p3304_p4 = por %p3303_p3, %p3302_p2 }
0x175f   :  { %p3305_p5 = pnand %p3304_p4, %p3298_p1 }
0x1815   :  { %v2377_v41 = vpop.f32.mrf.mxu0 }
0x1816   :  { %v2378_v44 = vadd.f32 %v3236_v42, %v2377_v41 }
0x1817   :  { %v3107_v45 = vpop.f32.mrf.mxu0 }
0x1818   :  { %v2382_v47 = vmul.f32 0.049160007, %v2378_v44 }
0x181a   :  { %v2383_v48 = vsub.f32 %v2381_v46, %v2382_v47 }
0x181c   :  { %v2710_v49 = vclamps-f32 %v2383_v48, 1.0 }
0x181e   :  { %v2386_v51 = vsel %vm84_vm3, %v2710_v49, %v2383_v48 }
0x181f   :  { %v2387_v52 = vmul.f32 0.9585693, %v2386_v51 }
0x1821   :  { %v2389_v55 = vadd.f32 %v2388_v53, %v2387_v52 }
0x1823   :  { %v2393_v56 = vadd.f32 %v2392_v54, %v2389_v55 }
0x1825   :  { %3113 = vmatmul.mubr.msk.f32.vlgmr.msra.gmra.mxu1 %vm90_vm1, %v2393_v56  ;;  %v2636_v5 = vmul.f32 1.00005, %v2393_v56  ;;  %v2642_v29 = vmul.f32 0.0, %v2393_v56 }
0x1826   :  { %3127 = vmatpush3.msra.mxu1 %v3819_v38  ;;  %3134 = vmatprep.mubr.msk.f32.mxu1 %vm3329_vm0, %v3328_v0 }
0x1827   :  { %3128 = vmatprep.subr.mxu1 %v3328_v0 }
0x1828   :  { %3129 = vmatpush3.msra.mxu1 %v3828_v15 }
0x1829   :  { %3130 = vmatprep.subr.mxu1 %v3328_v0 }
0x182a   :  { %3131 = vmatpush3.msra.mxu1 %v3835_v16 }
0x182b   :  { %3132 = vmatprep.subr.mxu1 %v3328_v0 }
0x182c   :  { %3133 = vmatpush3.msra.mxu1 %v3842_v2 }
0x18e5   :  { %v2468_v57 = vpop.f32.mrf.mxu1 }
0x18e6   :  { %v2469_v58 = vadd.f32 %v2711_v25, %v2468_v57 }
0x18e7   :  { %v3114_v59 = vpop.f32.mrf.mxu1 }
0x18e8   :  { %v2472_v60 = vmul.f32 1.442695, %v2469_v58 }
0x18ea   :  { %3217 = vpow2.f32 %v2472_v60 }
0x18f7   :  { %v3218_v61 = vpop.eup %3217 }
0x18f8   :  { %v2474_v62 = vadd.f32 1.0, %v3218_v61 }
0x18fa   :  { %v2475_v63 = vmul.f32 %v2474_v62, %v2474_v62 }
0x18fc   :  { %v2476_v3 = vadd.f32 1.0, %v2475_v63 }
0x18fe   :  { %3219 = vrcp.f32 %v2476_v3 }
0x190b   :  { %v3220_v8 = vpop.eup %3219 }
0x190c   :  { %v2478_v9 = vmul.f32 2.0, %v3220_v8 }
0x190e   :  { %v2479_v10 = vsub.f32 1.0, %v2478_v9 }
0x1910   :  { %v2480_v0 = vmul.f32 %v2479_v10, %v2469_v58 }
0x1912   :  { %3124 = vmatmul.mubr.msk.f32.vlgmr.msra.gmra.mxu0 %vm179_vm2, %v2480_v0 }
0x19d2   :  { %v2550_v11 = vpop.f32.mrf.mxu0 }
0x19d3   :  { %v2551_v12 = vadd.f32 %v3859_v31, %v2550_v11 }
0x19d4   :  { %v3125_v13 = vpop.f32.mrf.mxu0 }
0x19d5   :  { %v2554_v1 = vmul.f32 1.442695, %v2551_v12 }
0x19d7   :  { %3221 = vpow2.f32 %v2554_v1 }
0x19e4   :  { %v3222_v14 = vpop.eup %3221 }
0x19e5   :  { %v2556_v38 = vadd.f32 1.0, %v3222_v14 }
0x19e7   :  { %v2557_v15 = vmul.f32 %v2556_v38, %v2556_v38 }
0x19e9   :  { %v2558_v16 = vadd.f32 1.0, %v2557_v15 }
0x19eb   :  { %3223 = vrcp.f32 %v2558_v16 }
0x19f8   :  { %v3224_v2 = vpop.eup %3223 }
0x19f9   :  { %v2560_v4 = vmul.f32 2.0, %v3224_v2 }
0x19fb   :  { %v2561_v17 = vsub.f32 1.0, %v2560_v4 }
0x19fd   :  { %v2562_v18 = vmul.f32 %v2561_v17, %v2551_v12 }
0x19ff   :  { %3135 = vmatmul.mubr.msk.f32.vlgmr.msra.gmra.mxu1 %vm179_vm2, %v2562_v18 }
0x1abf   :  { %v2632_v19 = vpop.f32.mrf.mxu1 }
0x1ac0   :  { %v2633_v20 = vadd.f32 %v3236_v42, %v2632_v19 }
0x1ac1   :  { %v3136_v26 = vpop.f32.mrf.mxu1 }
0x1ac2   :  { %v2637_v27 = vmul.f32 0.0100005, %v2633_v20 }
0x1ac4   :  { %v2638_v6 = vsub.f32 %v2636_v5, %v2637_v27 }
0x1ac6   :  { %v2715_v28 = vclamps-f32 %v2638_v6, 1.0 }
0x1ac8   :  { %v2641_v7 = vsel %vm84_vm3, %v2715_v28, %v2638_v6 }
0x1ac9   :  { %v2643_v30 = vadd.f32 %v2642_v29, %v2641_v7 }
0x1acb   :  { %v2716_v21 = vclamps-f32 %v2643_v30, 1.0 }
0x1acd   :  { %v2646_v31 = vsel %vm84_vm3, %v2716_v21, %v2643_v30 }
0x1ace   :  { %2647 = vst.msk [vmem:[#allocation8] sm:$0xff] %vm90_vm1, %v2646_v31 }
0x1acf   :  { %3308 = shalt.err (!%p3305_p5)
}
0x1ad0   :  { %2657 = dma.vmem_to_hbm [thread:$0]  %s2655_s25, 128, %s3911_s8, [#allocation4]  }
0x1ad1   :  { %3321 = dma.done.wait [#allocation4], 128  }
0x1ad2   :  { %3322 = vsyncadd [#allocation4], 4294967168 }
0x1ad3   :  { %2661 = vsyncpa [#allocation3], 1 }
0x1ad4   :  { %2662 = vsyncpa [#allocation6], 1 }
0x1ad5   :  { %2663 = vsyncpa [#allocation4], 1 }

</bundles_post_ra>
